<compile_context>
chip_gen: v6e
topology: v6e:2x2x1
jax: 0.10.0
libtpu: 0.0.40
codegen_flags: <defaults>
</compile_context>

<pallas_src>
import jax
import jax.numpy as jnp
from jax import lax
from jax.experimental import pallas as pl
from jax.experimental.pallas import tpu as pltpu


# ----------------------------------------------------------------------------
# Pallas kernel: one batch element per grid step.
#   x_ref    : (1, H, W, Cin)   bf16  NHWC input tile (unpadded)
#   w_ref    : (Cout, 9*Cin)    bf16  3x3 conv weights, im2col (tap-major)
#                                     order, BN scale pre-folded
#   b_ref    : (Cout, 1)        f32   folded BN bias
#   out_ref  : (1, Cout, H*W)   out   channel-major, lane-dense output
#   xpad_ref : (H+2, W+2, Cin)  bf16  VMEM scratch holding the zero halo
# ----------------------------------------------------------------------------
def conv_bn_relu_kernel(x_ref, w_ref, b_ref, out_ref, xpad_ref):
    _, H, W, Cin = x_ref.shape
    pdt = xpad_ref.dtype

    # Zero only the 1-pixel border (the interior is fully overwritten below,
    # so a full-scratch zero every step would be wasted vst traffic).
    zrow = jnp.zeros((1, W + 2, Cin), pdt)
    zcol = jnp.zeros((H, 1, Cin), pdt)
    xpad_ref[0:1, :, :] = zrow                  # top halo row
    xpad_ref[H + 1:H + 2, :, :] = zrow          # bottom halo row
    xpad_ref[1:H + 1, 0:1, :] = zcol            # left halo column
    xpad_ref[1:H + 1, W + 1:W + 2, :] = zcol    # right halo column

    # Interior copy: bf16 -> bf16, no cast (replaces wrapper-side jnp.pad).
    xpad_ref[1:H + 1, 1:W + 1, :] = x_ref[0]

    # im2col: concatenate the 9 shifted views along channels so all taps live
    # in the contraction dim (K = 9*Cin) of a single MXU matmul.
    taps = []
    for ky in range(3):
        for kx in range(3):
            taps.append(xpad_ref[ky:ky + H, kx:kx + W, :])
    patch = jnp.concatenate(taps, axis=-1).reshape(H * W, 9 * Cin)   # bf16

    # (Cout, 9Cin) x (H*W, 9Cin) contracting the shared last dim -> (Cout, H*W)
    # f32 accumulation; result is already channel-major (lane axis = H*W).
    acc = lax.dot_general(
        w_ref[...], patch,
        dimension_numbers=(((1,), (1,)), ((), ())),
        preferred_element_type=jnp.float32)                          # f32

    # BN scale is folded into the weights; only bias + ReLU remain (VPU, f32).
    feat = jnp.maximum(acc + b_ref[...], 0.0)

    out_ref[0] = feat.astype(out_ref.dtype)


def _vmem_limit_bytes(H, W, Cin, Cout):
    """Explicit scoped-VMEM budget derived from the tile sizes (x2 buffers),
    clamped so it also stays inside v7x's 64 MiB physical VMEM."""
    bf2, f4 = 2, 4
    est = (
        H * W * Cin * bf2 * 2                 # input tile, double buffered
        + Cout * 9 * Cin * bf2 * 2            # weights
        + Cout * 1 * f4 * 2                   # bias
        + Cout * H * W * f4 * 2               # output tile, double buffered
        + (H + 2) * (W + 2) * Cin * bf2       # halo scratch
        + H * W * 9 * Cin * bf2               # im2col temporary
        + Cout * H * W * f4                   # f32 accumulator
    )
    est *= 4                                  # headroom: layout padding, temps
    return int(min(max(est, 16 * 1024 * 1024), 64 * 1024 * 1024))


# ----------------------------------------------------------------------------
# Wrapper: NCHW in / NCHW out, BN folding, weight im2col layout, pallas_call.
# ----------------------------------------------------------------------------
def conv_bn_relu(x_nchw, params, eps=1e-5, out_dtype=None):
    N, Cin, H, W = x_nchw.shape
    w_conv = params["w_conv"]                     # (Cout, Cin, 3, 3)
    Cout = w_conv.shape[0]
    out_dtype = x_nchw.dtype if out_dtype is None else out_dtype

    # Fold BN (eval mode): y = gamma * (x - mean) / sqrt(var + eps) + beta.
    s = params["bn_gamma"] * lax.rsqrt(params["bn_var"] + eps)       # (Cout,)
    b = params["bn_beta"] - params["bn_mean"] * s                    # (Cout,)
    bias = b.reshape(Cout, 1).astype(jnp.float32)

    # NCHW -> NHWC and bf16 cast (halves input HBM/DMA bytes; f32 accumulation
    # in-kernel keeps the math accurate).
    x_nhwc = jnp.transpose(x_nchw, (0, 2, 3, 1)).astype(jnp.bfloat16)

    # (Cout, Cin, ky, kx) -> (Cout, ky, kx, Cin) -> (Cout, 9*Cin), matching the
    # in-kernel tap-major im2col channel order. BN scale folded in (f32) before
    # the bf16 cast, so the kernel epilogue is just bias + ReLU.
    w_t = jnp.transpose(w_conv, (0, 2, 3, 1)).reshape(Cout, 9 * Cin)
    w_t = (w_t * s[:, None]).astype(jnp.bfloat16)

    out = pl.pallas_call(
        conv_bn_relu_kernel,
        out_shape=jax.ShapeDtypeStruct((N, Cout, H * W), out_dtype),
        grid_spec=pltpu.PrefetchScalarGridSpec(
            num_scalar_prefetch=0,
            grid=(N,),
            in_specs=[
                pl.BlockSpec((1, H, W, Cin), lambda n: (n, 0, 0, 0)),
                pl.BlockSpec((Cout, 9 * Cin), lambda n: (0, 0)),
                pl.BlockSpec((Cout, 1), lambda n: (0, 0)),
            ],
            out_specs=pl.BlockSpec((1, Cout, H * W), lambda n: (n, 0, 0)),
            scratch_shapes=[pltpu.VMEM((H + 2, W + 2, Cin), jnp.bfloat16)],
        ),
        compiler_params=pltpu.CompilerParams(
            dimension_semantics=("parallel",),
            vmem_limit_bytes=_vmem_limit_bytes(H, W, Cin, Cout)),
    )(x_nhwc, w_t, bias)

    # (N, Cout, H*W) -> (N, Cout, H, W): pure reshape, no transpose pass.
    return out.reshape(N, Cout, H, W)


# ----------------------------------------------------------------------------
# Pure-JAX reference (mirrors the PyTorch forward, eval-mode BN).
# ----------------------------------------------------------------------------
def reference(x_nchw, params, eps=1e-5):
    s = params["bn_gamma"] * lax.rsqrt(params["bn_var"] + eps)
    b = params["bn_beta"] - params["bn_mean"] * s
    y = lax.conv_general_dilated(
        x_nchw, params["w_conv"], window_strides=(1, 1), padding="SAME",
        dimension_numbers=("NCHW", "OIHW", "NCHW"))
    y = y * s[None, :, None, None] + b[None, :, None, None]
    return jnp.maximum(y, 0.0)


# ----------------------------------------------------------------------------
# Deterministic parameter init (kaiming_normal with a=1 for the conv, BN
# defaults perturbed so the test is non-trivial).
# ----------------------------------------------------------------------------
def init_params(key, in_chan, out_chan):
    ks = jax.random.split(key, 3)
    std = (1.0 / (in_chan * 9)) ** 0.5
    return {
        "w_conv": (jax.random.normal(ks[0], (out_chan, in_chan, 3, 3),
                                     jnp.float32) * std),
        "bn_gamma": 1.0 + 0.1 * jax.random.normal(ks[1], (out_chan,), jnp.float32),
        "bn_beta": 0.1 * jax.random.normal(ks[2], (out_chan,), jnp.float32),
        "bn_mean": jnp.zeros((out_chan,), jnp.float32),
        "bn_var": jnp.ones((out_chan,), jnp.float32),
    }


if __name__ == "__main__":
    key = jax.random.PRNGKey(0)
    k_x, k_p = jax.random.split(key)

    N, Cin, H, W = 2, 4, 16, 16
    Cout = 8

    x = jax.random.normal(k_x, (N, Cin, H, W), jnp.float32)
    params = init_params(k_p, Cin, Cout)

    out = jax.block_until_ready(conv_bn_relu(x, params))
    ref = jax.block_until_ready(reference(x, params))

    assert out.shape == (N, Cout, H, W), out.shape
    # bf16 MXU operands (scale folded into bf16 weights, f32 accumulation) vs
    # an all-f32 reference conv: tolerance loosened accordingly.
    assert jnp.allclose(out, ref, rtol=5e-2, atol=5e-2), (
        float(jnp.max(jnp.abs(out - ref))))

    print("KERNEL_OK")
</pallas_src>

<mosaic_0001>
module attributes {stable_mosaic.version = 11 : i64} {
  func.func @conv_bn_relu_kernel(%arg0: i32, %arg1: memref<1x16x16x4xbf16, #tpu.memory_space<vmem>>, %arg2: memref<8x36xbf16, #tpu.memory_space<vmem>>, %arg3: memref<8x1xf32, #tpu.memory_space<vmem>>, %arg4: memref<1x8x256xf32, #tpu.memory_space<vmem>>, %arg5: memref<18x18x4xbf16, #tpu.memory_space<vmem>>) attributes {dimension_semantics = [#tpu.dimension_semantics<parallel>], iteration_bounds = array<i64: 2>, scalar_prefetch = 0 : i64, scratch_operands = 1 : i64, tpu.core_type = #tpu.core_type<tc>, window_params = [{transform_indices = @transform_0, window_bounds = array<i64: 1, 16, 16, 4>}, {pipeline_mode = #tpu.pipeline_mode<synchronous>, transform_indices = @transform_1, window_bounds = array<i64: 8, 36>}, {pipeline_mode = #tpu.pipeline_mode<synchronous>, transform_indices = @transform_2, window_bounds = array<i64: 8, 1>}, {transform_indices = @transform_3, window_bounds = array<i64: 1, 8, 256>}]} {
    %cst = arith.constant 0.000000e+00 : bf16
    %0 = vector.broadcast %cst : bf16 to vector<1x18x4xbf16>
    %cst_0 = arith.constant 0.000000e+00 : bf16
    %1 = vector.broadcast %cst_0 : bf16 to vector<16x1x4xbf16>
    %c0 = arith.constant 0 : index
    %c0_1 = arith.constant 0 : index
    %c0_2 = arith.constant 0 : index
    %2 = vector.load %arg5[%c0, %c0_1, %c0_2] : memref<18x18x4xbf16, #tpu.memory_space<vmem>>, vector<1x18x4xbf16>
    tpu.vector_store %arg5[%c0, %c0_1, %c0_2], %0 {strides = array<i32>} : memref<18x18x4xbf16, #tpu.memory_space<vmem>>, vector<1x18x4xbf16>,
    %c17 = arith.constant 17 : index
    %c0_3 = arith.constant 0 : index
    %c0_4 = arith.constant 0 : index
    %3 = vector.load %arg5[%c17, %c0_3, %c0_4] : memref<18x18x4xbf16, #tpu.memory_space<vmem>>, vector<1x18x4xbf16>
    tpu.vector_store %arg5[%c17, %c0_3, %c0_4], %0 {strides = array<i32>} : memref<18x18x4xbf16, #tpu.memory_space<vmem>>, vector<1x18x4xbf16>,
    %c1 = arith.constant 1 : index
    %c0_5 = arith.constant 0 : index
    %c0_6 = arith.constant 0 : index
    %4 = vector.load %arg5[%c1, %c0_5, %c0_6] : memref<18x18x4xbf16, #tpu.memory_space<vmem>>, vector<16x1x4xbf16>
    tpu.vector_store %arg5[%c1, %c0_5, %c0_6], %1 {strides = array<i32>} : memref<18x18x4xbf16, #tpu.memory_space<vmem>>, vector<16x1x4xbf16>,
    %c1_7 = arith.constant 1 : index
    %c17_8 = arith.constant 17 : index
    %c0_9 = arith.constant 0 : index
    %5 = vector.load %arg5[%c1_7, %c17_8, %c0_9] : memref<18x18x4xbf16, #tpu.memory_space<vmem>>, vector<16x1x4xbf16>
    tpu.vector_store %arg5[%c1_7, %c17_8, %c0_9], %1 {strides = array<i32>} : memref<18x18x4xbf16, #tpu.memory_space<vmem>>, vector<16x1x4xbf16>,
    %c0_10 = arith.constant 0 : index
    %c0_11 = arith.constant 0 : index
    %c0_12 = arith.constant 0 : index
    %c0_13 = arith.constant 0 : index
    %6 = vector.load %arg1[%c0_10, %c0_11, %c0_12, %c0_13] : memref<1x16x16x4xbf16, #tpu.memory_space<vmem>>, vector<1x16x16x4xbf16>
    %7 = vector.shape_cast %6 : vector<1x16x16x4xbf16> to vector<16x16x4xbf16>
    %c1_14 = arith.constant 1 : index
    %c1_15 = arith.constant 1 : index
    %c0_16 = arith.constant 0 : index
    %8 = vector.load %arg5[%c1_14, %c1_15, %c0_16] : memref<18x18x4xbf16, #tpu.memory_space<vmem>>, vector<16x16x4xbf16>
    tpu.vector_store %arg5[%c1_14, %c1_15, %c0_16], %7 {strides = array<i32>} : memref<18x18x4xbf16, #tpu.memory_space<vmem>>, vector<16x16x4xbf16>,
    %c0_17 = arith.constant 0 : index
    %c0_18 = arith.constant 0 : index
    %c0_19 = arith.constant 0 : index
    %9 = vector.load %arg5[%c0_17, %c0_18, %c0_19] : memref<18x18x4xbf16, #tpu.memory_space<vmem>>, vector<16x16x4xbf16>
    %c0_20 = arith.constant 0 : index
    %c1_21 = arith.constant 1 : index
    %c0_22 = arith.constant 0 : index
    %10 = vector.load %arg5[%c0_20, %c1_21, %c0_22] : memref<18x18x4xbf16, #tpu.memory_space<vmem>>, vector<16x16x4xbf16>
    %c0_23 = arith.constant 0 : index
    %c2 = arith.constant 2 : index
    %c0_24 = arith.constant 0 : index
    %11 = vector.load %arg5[%c0_23, %c2, %c0_24] : memref<18x18x4xbf16, #tpu.memory_space<vmem>>, vector<16x16x4xbf16>
    %c1_25 = arith.constant 1 : index
    %c0_26 = arith.constant 0 : index
    %c0_27 = arith.constant 0 : index
    %12 = vector.load %arg5[%c1_25, %c0_26, %c0_27] : memref<18x18x4xbf16, #tpu.memory_space<vmem>>, vector<16x16x4xbf16>
    %c1_28 = arith.constant 1 : index
    %c1_29 = arith.constant 1 : index
    %c0_30 = arith.constant 0 : index
    %13 = vector.load %arg5[%c1_28, %c1_29, %c0_30] : memref<18x18x4xbf16, #tpu.memory_space<vmem>>, vector<16x16x4xbf16>
    %c1_31 = arith.constant 1 : index
    %c2_32 = arith.constant 2 : index
    %c0_33 = arith.constant 0 : index
    %14 = vector.load %arg5[%c1_31, %c2_32, %c0_33] : memref<18x18x4xbf16, #tpu.memory_space<vmem>>, vector<16x16x4xbf16>
    %c2_34 = arith.constant 2 : index
    %c0_35 = arith.constant 0 : index
    %c0_36 = arith.constant 0 : index
    %15 = vector.load %arg5[%c2_34, %c0_35, %c0_36] : memref<18x18x4xbf16, #tpu.memory_space<vmem>>, vector<16x16x4xbf16>
    %c2_37 = arith.constant 2 : index
    %c1_38 = arith.constant 1 : index
    %c0_39 = arith.constant 0 : index
    %16 = vector.load %arg5[%c2_37, %c1_38, %c0_39] : memref<18x18x4xbf16, #tpu.memory_space<vmem>>, vector<16x16x4xbf16>
    %c2_40 = arith.constant 2 : index
    %c2_41 = arith.constant 2 : index
    %c0_42 = arith.constant 0 : index
    %17 = vector.load %arg5[%c2_40, %c2_41, %c0_42] : memref<18x18x4xbf16, #tpu.memory_space<vmem>>, vector<16x16x4xbf16>
    %18 = tpu.concatenate %9, %10, %11, %12, %13, %14, %15, %16, %17 in 2 : vector<16x16x4xbf16>, vector<16x16x4xbf16>, vector<16x16x4xbf16>, vector<16x16x4xbf16>, vector<16x16x4xbf16>, vector<16x16x4xbf16>, vector<16x16x4xbf16>, vector<16x16x4xbf16>, vector<16x16x4xbf16> -> vector<16x16x36xbf16>
    %19 = vector.shape_cast %18 : vector<16x16x36xbf16> to vector<256x36xbf16>
    %c0_43 = arith.constant 0 : index
    %c0_44 = arith.constant 0 : index
    %20 = vector.load %arg2[%c0_43, %c0_44] : memref<8x36xbf16, #tpu.memory_space<vmem>>, vector<8x36xbf16>
    %cst_45 = arith.constant dense<0.000000e+00> : vector<8x256xf32>
    %21 = tpu.matmul %20, %19, %cst_45 {dimension_numbers = #tpu.dot_dimension_numbers<[1], [1], [0], [0], [0, 0, 1, 0], [], []>} : vector<8x36xbf16>, vector<256x36xbf16>, vector<8x256xf32> -> vector<8x256xf32>
    %c0_46 = arith.constant 0 : index
    %c0_47 = arith.constant 0 : index
    %22 = vector.load %arg3[%c0_46, %c0_47] : memref<8x1xf32, #tpu.memory_space<vmem>>, vector<8x1xf32>
    %23 = vector.broadcast %22 : vector<8x1xf32> to vector<8x256xf32>
    %24 = arith.addf %21, %23 : vector<8x256xf32>
    %cst_48 = arith.constant 0.000000e+00 : f32
    %25 = vector.broadcast %cst_48 : f32 to vector<8x256xf32>
    %26 = arith.maximumf %24, %25 : vector<8x256xf32>
    %c0_49 = arith.constant 0 : index
    %c0_50 = arith.constant 0 : index
    %c0_51 = arith.constant 0 : index
    %27 = vector.load %arg4[%c0_49, %c0_50, %c0_51] : memref<1x8x256xf32, #tpu.memory_space<vmem>>, vector<1x8x256xf32>
    %28 = vector.shape_cast %27 : vector<1x8x256xf32> to vector<8x256xf32>
    %29 = vector.shape_cast %26 : vector<8x256xf32> to vector<1x8x256xf32>
    tpu.vector_store %arg4[%c0_49, %c0_50, %c0_51], %29 {strides = array<i32>} : memref<1x8x256xf32, #tpu.memory_space<vmem>>, vector<1x8x256xf32>,
    return
  }
  func.func @transform_0(%arg0: i32) -> (i32, i32, i32, i32) {
    %c0_i32 = arith.constant 0 : i32
    %c0_i32_0 = arith.constant 0 : i32
    %c0_i32_1 = arith.constant 0 : i32
    %c0_i32_2 = arith.constant 0 : i32
    return %arg0, %c0_i32, %c0_i32_0, %c0_i32_1 : i32, i32, i32, i32
  }
  func.func @transform_1(%arg0: i32) -> (i32, i32) {
    %c0_i32 = arith.constant 0 : i32
    %c0_i32_0 = arith.constant 0 : i32
    %c0_i32_1 = arith.constant 0 : i32
    return %c0_i32, %c0_i32_0 : i32, i32
  }
  func.func @transform_2(%arg0: i32) -> (i32, i32) {
    %c0_i32 = arith.constant 0 : i32
    %c0_i32_0 = arith.constant 0 : i32
    %c0_i32_1 = arith.constant 0 : i32
    return %c0_i32, %c0_i32_0 : i32, i32
  }
  func.func @transform_3(%arg0: i32) -> (i32, i32, i32) {
    %c0_i32 = arith.constant 0 : i32
    %c0_i32_0 = arith.constant 0 : i32
    %c0_i32_1 = arith.constant 0 : i32
    return %arg0, %c0_i32, %c0_i32_0 : i32, i32, i32
  }
}

</mosaic_0001>

<bundles_post_ra>
// kernel: tpu_custom_call.1
= control target key start
LH: loop header
LB: loop body
LE: loop exit
PB: predicated region body
PF: predicated region fallthrough
CT: control target
= control target key end

     0   :  { %8 = vsyncpa [#allocation4], 0  ;;  %s4665_s0 = inlined_call_operand.vmem [shape: bf16[2,16,16,4], index: 0, kind: input, shape index: {}]   ;;  %s4666_s1 = inlined_call_operand.vmem [shape: bf16[8,36], index: 1, kind: input, shape index: {}]   ;;  %s4667_s2 = inlined_call_operand.vmem [shape: f32[8,1], index: 2, kind: input, shape index: {}]   ;;  %s4668_s3 = inlined_call_operand.hbm [shape: f32[2,8,256], index: 3, kind: output, shape index: {}]  }
   0x1   :  { %10 = vsyncpa [#allocation4 + $0x1], 0  ;;  %s3343_s12 = smov 0   ;;  %s3345_s13 = smov 0  }
   0x2   :  { %s3347_s14 = smov 0   ;;  %s3349_s15 = smov 0  }
   0x3 LB: > { %s3364_s16 = sadd.s32 4294967295, %s3311_s15   ;;  %s2874_s17 = sadd.s32 4294967294, %s3311_s15   ;;  %s3311_s15 = sphi %s3349_s15, %s4682_s15   ;;  %s3307_s14 = sphi %s3347_s14, %s4681_s14   ;;  %s3303_s13 = sphi %s3345_s13, %s4680_s13   ;;  %s3299_s12 = sphi %s3343_s12, %s4679_s12  }
   0x4   : > { %s3368_s18 = sadd.s32 1, %s3311_s15   ;;  %s91_s19 = sadd.s32 1, %s3307_s14 }
   0x5   : > { %s88_s20 = ssub.s32 %s3311_s15, %s3368_s18  ;;  %p101_p0 = scmp.ne.s32.totalorder %s3307_s14, %s3303_s13 }
   0x6   : > { %p89_p1 = scmp.eq.s32.totalorder %s88_s20, 0  ;;  %p102_p2 = scmp.eq.s32.totalorder %s3364_s16, 1 }
   0x7   : > { %p107_p3 = scmp.ne.s32.totalorder %s3303_s13, %s3299_s12  ;;  %p108_p4 = scmp.eq.s32.totalorder %s2874_s17, 1 }
   0x8   : > { %s3379_s21 = scalar_select %p89_p1, %s3307_s14, %s91_s19  }
   0x9   : > { %p3381_p5 = por %p102_p2, %p101_p0  ;;  %p3385_p6 = por %p108_p4, %p107_p3 }
   0xa   : > { %p2877_p7 = scmp.ge.s32.totalorder %s3311_s15, 1  ;;  %p140_p8 = scmp.lt.s32.totalorder %s3311_s15, 3 }
   0xc   : > { %p141_p9 = pnand %p2877_p7, %p140_p8 }
   0xd   : > { %p164_p10 = scmp.lt.s32.totalorder (!%p141_p9), %s3364_s16, 1  ;;  %s3314_s29 = smov (!%p141_p9), 24  }
   0xe   : > { %144 = sbr.rel (%p141_p9) target bundleno = 660 (0x294), region = 32  ;;  %s3315_s30 = smov (!%p141_p9), 32  }
   0xf   : > { %s3316_s4 = smov (!%p141_p9), 28   ;;  %s3317_s5 = smov (!%p141_p9), 12  }
  0x10   : > { %s3318_s6 = smov (!%p141_p9), 20   ;;  %s3319_s7 = smov (!%p141_p9), 8  }
  0x11   : > { %s3320_s8 = smov (!%p141_p9), 4   ;;  %s3321_s9 = smov (!%p141_p9), 16  }
  0x12   : > { %s161_s20 = sand.u32 (!%p141_p9), 1, %s3303_s13  }
  0x13   : > { %vm170_vm0 = vcmask 27648   ;;  %vm173_vm1 = vcmask 24576   ;;  %vm181_vm2 = vsmask.f32 256  ;;  %v3313_v0 = vmov 0   ;;  %s165_s24 = scalar_select %p164_p10, %s3364_s16, 1 }
  0x14   : > { %176 = vst.msk [vmem:[#allocation2 + $0xcc] sm:$0xf] %vm170_vm0, %v3313_v0  ;;  %177 = vst.msk [vmem:[#allocation2 + $0xd0] sm:$0xf] %vm170_vm0, %v3313_v0  ;;  %vm231_vm4 = vsmask.f32 7938  ;;  %3107 = vset.pattern.permute.xlu0 %v3313_v0 }
  0x15   : > { %171 = vst.msk [vmem:[#allocation2] sm:$0xf] %vm170_vm0, %v3313_v0  ;;  %172 = vst.msk [vmem:[#allocation2 + $0x4] sm:$0xf] %vm170_vm0, %v3313_v0  ;;  %v228_v2 = vld [vmem:[#allocation2 + $0xc0] sm:$0x1] }
  0x16   : > { %178 = vst.msk [vmem:[#allocation2 + $0xd4] sm:$0x1] %vm173_vm1, %v3313_v0  ;;  %vm3396_vm3 = vmand %vm173_vm1, %vm181_vm2  ;;  %v204_v5 = vld [vmem:[#allocation2 + $0x60] sm:$0x1]  ;;  %v207_v6 = vld [vmem:[#allocation2 + $0x6c] sm:$0x1] }
  0x17   : > { %174 = vst.msk [vmem:[#allocation2 + $0x8] sm:$0x1] %vm173_vm1, %v3313_v0  ;;  %vm3402_vm5 = vmand %vm173_vm1, %vm231_vm4  ;;  %v229_v4 = vsel %vm3396_vm3, 0, %v228_v2  ;;  %v205_v7 = vsel %vm3396_vm3, 0, %v204_v5  ;;  %v208_v8 = vsel %vm3396_vm3, 0, %v207_v6  ;;  %s3031_s25 = sshll.u32 %s165_s24, 7 }
  0x18   : > { %230 = vst [vmem:[#allocation2 + $0xc0] sm:$0x1] %v229_v4  ;;  %v201_v9 = vld [vmem:[#allocation2 + $0x54] sm:$0x1]  ;;  %206 = vst [vmem:[#allocation2 + $0x60] sm:$0x1] %v205_v7  ;;  %s3422_s28 = scalar_lea.vmem %s4665_s0, %s3031_s25 }
  0x19   : > { %209 = vst [vmem:[#allocation2 + $0x6c] sm:$0x1] %v208_v8  ;;  %v202_v10 = vsel %vm3396_vm3, 0, %v201_v9  ;;  %v251_v11 = vld [vmem:[#allocation2 + $0x5c] sm:$0x1]  ;;  %vm1343_vm7 = vcmask 1046528   ;;  %vm3436_vm9 = vmand %vm170_vm0, %vm231_vm4 }
  0x1a   : > { %v254_v12 = vld [vmem:[#allocation2 + $0x68] sm:$0x1]  ;;  %vm1070_vm6 = vsmask.f32 7424  ;;  %203 = vst [vmem:[#allocation2 + $0x54] sm:$0x1] %v202_v10 }
  0x1b   : > { %v252_v13 = vsel %vm3402_vm5, 0, %v251_v11  ;;  %v255_v14 = vsel %vm3402_vm5, 0, %v254_v12  ;;  %v225_v15 = vld [vmem:[#allocation2 + $0xb4] sm:$0x1]  ;;  %vm313_vm8 = vsmask.f32 4368 }
  0x1c   : > { %253 = vst [vmem:[#allocation2 + $0x5c] sm:$0x1] %v252_v13  ;;  %256 = vst [vmem:[#allocation2 + $0x68] sm:$0x1] %v255_v14  ;;  %v226_v16 = vsel %vm3396_vm3, 0, %v225_v15  ;;  %vm2448_vm11 = vcmask 31744  }
  0x1d   : > { %v275_v17 = vld [vmem:[#allocation2 + $0xbc] sm:$0x1]  ;;  %v908_v18 = vld [vmem:[#allocation2 + $0xcc] sm:$0xf]  ;;  %v909_v19 = vld [vmem:[#allocation2 + $0xd0] sm:$0xf] }
  0x1e   : > { %v941_v20 = vld [vmem:[#allocation2 + $0xcc] sm:$0xe]  ;;  %227 = vst [vmem:[#allocation2 + $0xb4] sm:$0x1] %v226_v16  ;;  %v2992_v21 = vcombine.low %v908_v18, %v909_v19  ;;  %v276_v24 = vsel %vm3402_vm5, 0, %v275_v17  ;;  %vm3445_vm10 = vmor %vm181_vm2, %vm313_vm8  ;;  %vm2481_vm12 = vcmask 64512  }
  0x1f   : > { %v3024_v22 = vcombine.low %v941_v20, %v909_v19  ;;  %v3110_v23 = vld [vmem:[#allocation2 + $0xd4] ss:$0 sps:$4 sm:$0x11]   ;;  %v311_v25 = vld [vmem:[%s3422_s28 + $0x78] sm:$0xf]  ;;  %vm2514_vm13 = vcmask 97280  }
  0x20   : > { %v312_v26 = vld [vmem:[%s3422_s28 + $0x7c] sm:$0xf]  ;;  %v295_v27 = vld [vmem:[%s3422_s28 + $0x38] sm:$0xf]  ;;  %277 = vst [vmem:[#allocation2 + $0xbc] sm:$0x1] %v276_v24  ;;  %2046 = vrot.lane.b32.xlu1 %v2992_v21, %s3314_s29 }
  0x21   : > { %v2279_v28 = vshll.u32 %v2992_v21, 16  ;;  %v2413_v29 = vrot.slane %v3024_v22, 1  ;;  %v2414_v30 = vrot.slane %v3110_v23, 1  ;;  %v2277_v31 = vshrl.u32 %v2992_v21, 16  ;;  %v296_v36 = vld [vmem:[%s3422_s28 + $0x3c] sm:$0xf] }
  0x22   : > { %v2284_v32 = vshll.u32 %v3110_v23, 16  ;;  %v571_v33 = vshrl.u32 %v311_v25, 16  ;;  %v574_v34 = vshll.u32 %v311_v25, 16  ;;  %v579_v35 = vshrl.u32 %v312_v26, 16  ;;  %v742_v45 = vld [vmem:[#allocation2 + $0xc0] sm:$0xf] }
  0x23   : > { %v2415_v37 = vsel %vm1343_vm7, %v2413_v29, %v2414_v30  ;;  %v2281_v38 = vrot.slane %v2279_v28, 1  ;;  %v582_v39 = vshll.u32 %v312_v26, 16  ;;  %v435_v40 = vshrl.u32 %v295_v27, 16  ;;  %v297_v52 = vld [vmem:[%s3422_s28 + $0x40] sm:$0xf]  ;;  %s2878_s24 = sshll.u32 %s161_s20, 4 }
  0x24   : > { %v2286_v42 = vrot.slane %v2284_v32, 1  ;;  %v573_v43 = vrot.slane %v571_v33, 7  ;;  %v3440_v44 = vrot.slane %v579_v35, 7  ;;  %v438_v46 = vshll.u32 %v295_v27, 16  ;;  %2446 = vrot.lane.b32.xlu1 %v2415_v37, %s3315_s30  ;;  %v686_v56 = vld [vmem:[#allocation2 + $0x60] sm:$0xf] }
  0x25   : > { %v2282_v47 = vor.u32 %v2281_v38, %v2277_v31  ;;  %v437_v49 = vrot.slane %v435_v40, 7  ;;  %v443_v50 = vshrl.u32 %v296_v36, 16  ;;  %v446_v51 = vshll.u32 %v296_v36, 16  ;;  %v298_v57 = vld [vmem:[%s3422_s28 + $0x44] sm:$0xf]  ;;  %s3032_s25 = sshll.u32 %s3364_s16, 8 }
  0x26   : > { %v576_v53 = vor.u32 %v574_v34, %v573_v43  ;;  %v577_v54 = vrot.slane %v573_v43, 4  ;;  %v584_v55 = vor.u32 %v582_v39, %v3440_v44  ;;  %v293_v62 = vld [vmem:[%s3422_s28 + $0x30] sm:$0xf]  ;;  %v452_v2 = vshrl.u32 %v297_v52, 16  ;;  %v294_v5 = vld [vmem:[%s3422_s28 + $0x34] sm:$0xf] }
  0x27   : > { %v2287_v58 = vsel %vm1070_vm6, %v2282_v47, %v2286_v42  ;;  %v440_v59 = vor.u32 %v438_v46, %v437_v49  ;;  %v441_v60 = vrot.slane %v437_v49, 4  ;;  %v445_v61 = vrot.slane %v443_v50, 7  ;;  %v690_v10 = vld [vmem:[#allocation2 + $0x68] sm:$0x1]  ;;  %v309_v15 = vld [vmem:[%s3422_s28 + $0x70] sm:$0xf] }
  0x28   : > { %v585_v63 = vsel %vm3445_vm10, %v577_v54, %v584_v55  ;;  %v743_v0 = vsel %vm3436_vm9, %v576_v53, %v742_v45  ;;  %v455_v4 = vshll.u32 %v297_v52, 16  ;;  %2318 = vrot.lane.b32.xlu1 %v2287_v58, %s3316_s4  ;;  %v460_v9 = vshrl.u32 %v298_v57, 16  ;;  %v693_v18 = vld [vmem:[#allocation2 + $0x6c] sm:$0xf]  ;;  %v679_v27 = vld [vmem:[#allocation2 + $0x54] sm:$0xf] }
  0x29   : > { %744 = vst [vmem:[#allocation2 + $0xc0] sm:$0xf] %v743_v0  ;;  %745 = vst.msk [vmem:[#allocation2 + $0xc4] sm:$0xf] %vm170_vm0, %v585_v63  ;;  %v448_v6 = vor.u32 %v446_v51, %v445_v61  ;;  %v450_v7 = vrot.slane %v445_v61, 4  ;;  %v687_v8 = vsel %vm3436_vm9, %v440_v59, %v686_v56  ;;  %v454_v11 = vrot.slane %v452_v2, 7 }
  0x2a   : > { %688 = vst [vmem:[#allocation2 + $0x60] sm:$0xf] %v687_v8  ;;  %v463_v12 = vshll.u32 %v298_v57, 16  ;;  %v418_v13 = vshrl.u32 %v293_v62, 16  ;;  %v421_v14 = vshll.u32 %v293_v62, 16  ;;  %v3466_v17 = vrot.slane %v460_v9, 7 }
  0x2b   : > { %v449_v16 = vsel %vm3445_vm10, %v441_v60, %v448_v6  ;;  %v426_v19 = vshrl.u32 %v294_v5, 16  ;;  %v429_v20 = vshll.u32 %v294_v5, 16  ;;  %v457_v21 = vor.u32 %v455_v4, %v454_v11  ;;  %v683_v32 = vld [vmem:[#allocation2 + $0x5c] sm:$0x1]  ;;  %v257_v34 = vld [vmem:[#allocation2 + $0x74] sm:$0x1] }
  0x2c   : > { %689 = vst.msk [vmem:[#allocation2 + $0x64] sm:$0xf] %vm170_vm0, %v449_v16  ;;  %v458_v22 = vrot.slane %v454_v11, 4  ;;  %v420_v23 = vrot.slane %v418_v13, 7  ;;  %v691_v24 = vsel %vm3396_vm3, %v450_v7, %v690_v10  ;;  %v465_v25 = vor.u32 %v463_v12, %v3466_v17  ;;  %v310_v38 = vld [vmem:[%s3422_s28 + $0x74] sm:$0xf] }
  0x2d   : > { %v428_v26 = vrot.slane %v426_v19, 7  ;;  %692 = vst [vmem:[#allocation2 + $0x68] sm:$0x1] %v691_v24  ;;  %v554_v28 = vshrl.u32 %v309_v15, 16  ;;  %v694_v29 = vsel %vm3436_vm9, %v457_v21, %v693_v18  ;;  %v557_v33 = vshll.u32 %v309_v15, 16  ;;  %s163_s26 = scalar_lea.vmem [#allocation3], %s2878_s24 }
  0x2e   : > { %v423_v30 = vor.u32 %v421_v14, %v420_v23  ;;  %v424_v31 = vrot.slane %v420_v23, 4  ;;  %v466_v35 = vsel %vm3445_vm10, %v458_v22, %v465_v25  ;;  %695 = vst [vmem:[#allocation2 + $0x6c] sm:$0xf] %v694_v29  ;;  %v735_v40 = vld [vmem:[#allocation2 + $0xb4] sm:$0xf]  ;;  %v562_v55 = vshrl.u32 %v310_v38, 16 }
  0x2f   : > { %v431_v36 = vor.u32 %v429_v20, %v428_v26  ;;  %v433_v37 = vrot.slane %v428_v26, 4  ;;  %v556_v39 = vrot.slane %v554_v28, 7  ;;  %696 = vst.msk [vmem:[#allocation2 + $0x70] sm:$0xf] %vm170_vm0, %v466_v35  ;;  %v278_v46 = vld [vmem:[#allocation2 + $0xc8] sm:$0x1] }
  0x30   : > { %v843_v42 = vld [vmem:[#allocation2 + $0xc0] sm:$0xf]  ;;  %v3477_v43 = vld [vmem:[#allocation2 + $0xc4] sm:$0xf]  ;;  %v680_v45 = vsel %vm3436_vm9, %v423_v30, %v679_v27  ;;  %v222_v53 = vld [vmem:[#allocation2 + $0xa8] sm:$0x1] }
  0x31   : > { %v3483_v47 = vcombine.low %v843_v42, %v3477_v43  ;;  %v827_v49 = vld [vmem:[#allocation2 + $0x60] sm:$0xf]  ;;  %v432_v51 = vsel %vm3445_vm10, %v424_v31, %v431_v36  ;;  %681 = vst [vmem:[#allocation2 + $0x54] sm:$0xf] %v680_v45  ;;  %v684_v52 = vsel %vm3396_vm3, %v433_v37, %v683_v32  ;;  %v559_v54 = vor.u32 %v557_v33, %v556_v39  ;;  %v272_v57 = vld [vmem:[#allocation2 + $0xb0] sm:$0x1] }
  0x32   : > { %v868_v50 = vld [vmem:[#allocation2 + $0x60] sm:$0xe]  ;;  %682 = vst.msk [vmem:[#allocation2 + $0x58] sm:$0xf] %vm170_vm0, %v432_v51  ;;  %685 = vst [vmem:[#allocation2 + $0x5c] sm:$0x1] %v684_v52 }
  0x33   : > { %v565_v56 = vshll.u32 %v310_v38, 16  ;;  %v307_v58 = vld [vmem:[%s3422_s28 + $0x68] sm:$0xf]  ;;  %1534 = vrot.lane.b32.xlu1 %v3483_v47, %s3317_s5  ;;  %v828_v59 = vld [vmem:[#allocation2 + $0x64] sm:$0xf]  ;;  %v560_v60 = vrot.slane %v556_v39, 4  ;;  %v736_v5 = vsel %vm3436_vm9, %v559_v54, %v735_v40 }
  0x34   : > { %v258_v61 = vsel %vm3402_vm5, 0, %v257_v34  ;;  %v279_v62 = vsel %vm3402_vm5, 0, %v278_v46  ;;  %v3497_v63 = vcombine.low %v827_v49, %v828_v59  ;;  %v2968_v0 = vcombine.low %v868_v50, %v828_v59  ;;  %v3499_v2 = vld [vmem:[#allocation2 + $0x68] ss:$0 sps:$4 sm:$0x11]   ;;  %s2815_s27 = sshll.u32 %s163_s26, 4  ;;  %s2816_s27 = int_to_ptr.vmem [resolvable:$true] %s2815_s27 }
  0x35   : > { %v564_v4 = vrot.slane %v562_v55, 7  ;;  %259 = vst [vmem:[#allocation2 + $0x74] sm:$0x1] %v258_v61  ;;  %280 = vst [vmem:[#allocation2 + $0xc8] sm:$0x1] %v279_v62  ;;  %v586_v6 = vrot.slane %v3440_v44, 4 }
  0x36   : > { %737 = vst [vmem:[#allocation2 + $0xb4] sm:$0xf] %v736_v5  ;;  %v739_v7 = vld [vmem:[#allocation2 + $0xbc] sm:$0x1]  ;;  %v223_v8 = vsel %vm3396_vm3, 0, %v222_v53  ;;  %v273_v9 = vsel %vm3402_vm5, 0, %v272_v57  ;;  %1518 = vrot.lane.b32.xlu0 %v3497_v63, %s3317_s5 }
  0x37   : > { %v876_v10 = vld [vmem:[#allocation2 + $0xc0] sm:$0xe]  ;;  %v892_v11 = vld [vmem:[#allocation2 + $0x6c] sm:$0xf]  ;;  %v567_v12 = vor.u32 %v565_v56, %v564_v4  ;;  %224 = vst [vmem:[#allocation2 + $0xa8] sm:$0x1] %v223_v8 }
  0x38   : > { %274 = vst [vmem:[#allocation2 + $0xb0] sm:$0x1] %v273_v9  ;;  %v308_v13 = vld [vmem:[%s3422_s28 + $0x6c] sm:$0xf]  ;;  %v3511_v14 = vld [vmem:[#allocation2 + $0x70] sm:$0xf]  ;;  %v2976_v29 = vcombine.low %v876_v10, %v3477_v43 }
  0x39   : > { %v1877_v44 = vrot.slane %v2968_v0, 1  ;;  %v1878_v15 = vrot.slane %v3499_v2, 1  ;;  %v569_v16 = vrot.slane %v564_v4, 4  ;;  %v537_v18 = vshrl.u32 %v307_v58, 16  ;;  %v804_v21 = vld [vmem:[#allocation2 + $0x54] sm:$0xe] }
  0x3a   : > { %v467_v19 = vrot.slane %v3466_v17, 4  ;;  %v3516_v20 = vcombine.low %v892_v11, %v3511_v14  ;;  %v763_v22 = vld [vmem:[#allocation2 + $0x54] sm:$0xf]  ;;  %v568_v23 = vsel %vm3445_vm10, %v560_v60, %v567_v12  ;;  %v540_v24 = vshll.u32 %v307_v58, 16  ;;  %v764_v25 = vld [vmem:[#allocation2 + $0x58] sm:$0xf] }
  0x3b   : > { %738 = vst.msk [vmem:[#allocation2 + $0xb8] sm:$0xf] %vm170_vm0, %v568_v23  ;;  %v740_v26 = vsel %vm3396_vm3, %v569_v16, %v739_v7  ;;  %v539_v27 = vrot.slane %v537_v18, 7  ;;  %v545_v28 = vshrl.u32 %v308_v13, 16  ;;  %v933_v17 = vld [vmem:[#allocation2 + $0x6c] sm:$0xe]  ;;  %v2920_v31 = vcombine.low %v804_v21, %v764_v25 }
  0x3c   : > { %2030 = vrot.lane.b32.xlu0 %v3516_v20, %s3314_s29  ;;  %v3117_v30 = vld [vmem:[#allocation2 + $0x5c] ss:$0 sps:$4 sm:$0x11]   ;;  %v3526_v32 = vcombine.low %v763_v22, %v764_v25  ;;  %741 = vst [vmem:[#allocation2 + $0xbc] sm:$0x1] %v740_v26  ;;  %v1767_v33 = vshll.u32 %v3483_v47, 16  ;;  %v1879_v34 = vsel %vm1343_vm7, %v1877_v44, %v1878_v15  ;;  %v3016_v45 = vcombine.low %v933_v17, %v3511_v14 }
  0x3d   : > { %v697_v35 = vld [vmem:[#allocation2 + $0x74] sm:$0x1]  ;;  %v746_v36 = vld [vmem:[#allocation2 + $0xc8] sm:$0x1]  ;;  %v542_v37 = vor.u32 %v540_v24, %v539_v27  ;;  %v547_v38 = vrot.slane %v545_v28, 7  ;;  %v1365_v39 = vrot.slane %v2920_v31, 1 }
  0x3e   : > { %v1366_v40 = vrot.slane %v3117_v30, 1  ;;  %v698_v42 = vsel %vm3396_vm3, %v467_v19, %v697_v35  ;;  %v747_v43 = vsel %vm3396_vm3, %v586_v6, %v746_v36  ;;  %v779_v46 = vld [vmem:[#allocation2 + $0xb4] sm:$0xf]  ;;  %v543_v49 = vrot.slane %v539_v27, 4  ;;  %v728_v51 = vld [vmem:[#allocation2 + $0xa8] sm:$0xf] }
  0x3f   : > { %699 = vst [vmem:[#allocation2 + $0x74] sm:$0x1] %v698_v42  ;;  %748 = vst [vmem:[#allocation2 + $0xc8] sm:$0x1] %v747_v43  ;;  %v548_v50 = vshll.u32 %v308_v13, 16  ;;  %v1158_v54 = vshll.u32 %v3526_v32, 16  ;;  %v729_v56 = vsel %vm3436_vm9, %v542_v37, %v728_v51 }
  0x40   : > { %v1367_v52 = vsel %vm1343_vm7, %v1365_v39, %v1366_v40  ;;  %1918 = vrot.lane.b32.xlu0 %v1879_v34, %s3318_s6  ;;  %v812_v53 = vld [vmem:[#allocation2 + $0xb4] sm:$0xe]  ;;  %v552_v55 = vrot.slane %v547_v38, 4  ;;  %v732_v57 = vld [vmem:[#allocation2 + $0xb0] sm:$0x1]  ;;  %v1901_v58 = vrot.slane %v2976_v29, 1 }
  0x41   : > { %1406 = vrot.lane.b32.xlu1 %v1367_v52, %s3319_s7  ;;  %v1163_v59 = vshll.u32 %v3117_v30, 16  ;;  %v550_v60 = vor.u32 %v548_v50, %v547_v38  ;;  %730 = vst [vmem:[#allocation2 + $0xa8] sm:$0xf] %v729_v56  ;;  %v1671_v61 = vshll.u32 %v3497_v63, 16  ;;  %v1765_v0 = vshrl.u32 %v3483_v47, 16  ;;  %s3322_s16 = smov [#allocation3]  }
  0x42   : > { %v780_v62 = vld [vmem:[#allocation2 + $0xb8] sm:$0xf]  ;;  %v1769_v4 = vrot.slane %v1767_v33, 1  ;;  %v733_v5 = vsel %vm3396_vm3, %v552_v55, %v732_v57  ;;  %v2183_v6 = vshll.u32 %v3516_v20, 16  ;;  %v2389_v11 = vrot.slane %v3016_v45, 1 }
  0x43   : > { %v3546_v7 = vcombine.low %v779_v46, %v780_v62  ;;  %v3122_v8 = vld [vmem:[#allocation2 + $0xbc] ss:$0 sps:$4 sm:$0x11]   ;;  %v2928_v9 = vcombine.low %v812_v53, %v780_v62  ;;  %v551_v10 = vsel %vm3445_vm10, %v543_v49, %v550_v60  ;;  %734 = vst [vmem:[#allocation2 + $0xb0] sm:$0x1] %v733_v5  ;;  %v1156_v12 = vshrl.u32 %v3526_v32, 16 }
  0x44   : > { %v1160_v13 = vrot.slane %v1158_v54, 1  ;;  %731 = vst.msk [vmem:[#allocation2 + $0xac] sm:$0xf] %vm170_vm0, %v551_v10  ;;  %v1669_v47 = vshrl.u32 %v3497_v63, 16  ;;  %v1390_v44 = vrot.slane %v3122_v8, 1  ;;  %v1165_v15 = vrot.slane %v1163_v59, 1 }
  0x45   : > { %v1389_v14 = vrot.slane %v2928_v9, 1  ;;  %v1252_v16 = vshrl.u32 %v3546_v7, 16  ;;  %v1254_v19 = vshll.u32 %v3546_v7, 16  ;;  %v1259_v23 = vshll.u32 %v3122_v8, 16  ;;  %v841_v27 = vld [vmem:[#allocation2 + $0xb4] sm:$0xf] }
  0x46   : > { %v3554_v18 = vld [vmem:[#allocation2 + $0x74] ss:$0 sps:$4 sm:$0x11]   ;;  %v3125_v22 = vld [vmem:[#allocation2 + $0xc8] ss:$0 sps:$4 sm:$0x11]   ;;  %v1161_v25 = vor.u32 %v1160_v13, %v1156_v12  ;;  %v1770_v29 = vor.u32 %v1769_v4, %v1765_v0 }
  0x47   : > { %v1391_v21 = vsel %vm1343_vm7, %v1389_v14, %v1390_v44  ;;  %v2390_v24 = vrot.slane %v3554_v18, 1  ;;  %v1256_v26 = vrot.slane %v1254_v19, 1  ;;  %v1673_v63 = vrot.slane %v1671_v61, 1  ;;  %v3560_v31 = vld [vmem:[#allocation2 + $0xb8] sm:$0xf] }
  0x48   : > { %1422 = vrot.lane.b32.xlu1 %v1391_v21, %s3319_s7  ;;  %v1902_v28 = vrot.slane %v3125_v22, 1  ;;  %v1772_v17 = vshll.u32 %v3125_v22, 16  ;;  %v777_v30 = vld [vmem:[#allocation2 + $0xa8] sm:$0xf]  ;;  %v1676_v35 = vshll.u32 %v3499_v2, 16  ;;  %v1261_v42 = vrot.slane %v1259_v23, 1 }
  0x49   : > { %v2391_v33 = vsel %vm1343_vm7, %v2389_v11, %v2390_v24  ;;  %v198_v36 = vld [vmem:[#allocation2 + $0x48] sm:$0x1]  ;;  %v1257_v40 = vor.u32 %v1256_v26, %v1252_v16  ;;  %v811_v43 = vld [vmem:[#allocation2 + $0xa8] sm:$0xe]  ;;  %v1166_v45 = vsel %vm1070_vm6, %v1161_v25, %v1165_v15  ;;  %v248_v2 = vld [vmem:[#allocation2 + $0x50] sm:$0x1]  ;;  %v1674_v52 = vor.u32 %v1673_v63, %v1669_v47 }
  0x4a   : > { %v3563_v34 = vld [vmem:[#allocation2 + $0xb0] ss:$0 sps:$4 sm:$0x11]   ;;  %2430 = vrot.lane.b32.xlu0 %v2391_v33, %s3315_s30  ;;  %v1903_v37 = vsel %vm1343_vm7, %v1901_v58, %v1902_v28  ;;  %v1774_v38 = vrot.slane %v1772_v17, 1  ;;  %v291_v50 = vld [vmem:[%s3422_s28 + $0x28] sm:$0xf]  ;;  %v3576_v53 = vcombine.low %v841_v27, %v3560_v31 }
  0x4b   : > { %v778_v39 = vld [vmem:[#allocation2 + $0xac] sm:$0xf]  ;;  %v1247_v49 = vshll.u32 %v3563_v34, 16  ;;  %v2181_v54 = vshrl.u32 %v3516_v20, 16  ;;  %v1678_v59 = vrot.slane %v1676_v35, 1  ;;  %v1262_v60 = vsel %vm1070_vm6, %v1257_v40, %v1261_v42 }
  0x4c   : > { %1934 = vrot.lane.b32.xlu1 %v1903_v37, %s3318_s6  ;;  %v3570_v46 = vcombine.low %v777_v30, %v778_v39  ;;  %v1775_v51 = vsel %vm1070_vm6, %v1770_v29, %v1774_v38  ;;  %v292_v55 = vld [vmem:[%s3422_s28 + $0x2c] sm:$0xf]  ;;  %v2927_v58 = vcombine.low %v811_v43, %v778_v39  ;;  %v2185_v61 = vrot.slane %v2183_v6, 1  ;;  %v3592_v47 = vld [vmem:[#allocation2 + $0xbc] ss:$0 sps:$4 sm:$0x11]  }
  0x4d   : > { %v2188_v62 = vshll.u32 %v3554_v18, 16  ;;  %v199_v0 = vsel %vm3396_vm3, 0, %v198_v36  ;;  %v1249_v4 = vrot.slane %v1247_v49, 1  ;;  %v249_v5 = vsel %vm3402_vm5, 0, %v248_v2  ;;  %v875_v24 = vld [vmem:[#allocation2 + $0xb4] sm:$0xe] }
  0x4e   : > { %v1240_v56 = vshrl.u32 %v3570_v46, 16  ;;  %v1242_v57 = vshll.u32 %v3570_v46, 16  ;;  %1277 = vrot.lane.b32.xlu0 %v1166_v45, %s3320_s8  ;;  %200 = vst [vmem:[#allocation2 + $0x48] sm:$0x1] %v199_v0  ;;  %v401_v8 = vshrl.u32 %v291_v50, 16  ;;  %v1387_v9 = vrot.slane %v3563_v34, 1 }
  0x4f   : > { %v1755_v10 = vshll.u32 %v3576_v53, 16  ;;  %250 = vst [vmem:[#allocation2 + $0x50] sm:$0x1] %v249_v5  ;;  %v404_v6 = vshll.u32 %v291_v50, 16  ;;  %v409_v11 = vshrl.u32 %v292_v55, 16  ;;  %v1386_v13 = vrot.slane %v2927_v58, 1 }
  0x50   : > { %1806 = vrot.lane.b32.xlu1 %v1775_v51, %s3321_s9  ;;  %v1244_v20 = vrot.slane %v1242_v57, 1  ;;  %v403_v14 = vrot.slane %v401_v8, 7  ;;  %v412_v44 = vshll.u32 %v292_v55, 16  ;;  %v1679_v15 = vsel %vm1070_vm6, %v1674_v52, %v1678_v59  ;;  %v906_v63 = vld [vmem:[#allocation2 + $0xc0] sm:$0xf] }
  0x51   : > { %v2186_v16 = vor.u32 %v2185_v61, %v2181_v54  ;;  %v411_v18 = vrot.slane %v409_v11, 7  ;;  %v2190_v21 = vrot.slane %v2188_v62, 1  ;;  %v1388_v27 = vsel %vm1343_vm7, %v1386_v13, %v1387_v9  ;;  %v3604_v34 = vld [vmem:[#allocation2 + $0xc4] sm:$0xf]  ;;  %v219_v35 = vld [vmem:[#allocation2 + $0x9c] sm:$0x1] }
  0x52   : > { %v1245_v12 = vor.u32 %v1244_v20, %v1240_v56  ;;  %1293 = vrot.lane.b32.xlu0 %v1262_v60, %s3320_s8  ;;  %v406_v22 = vor.u32 %v404_v6, %v403_v14  ;;  %v407_v23 = vrot.slane %v403_v14, 4  ;;  %v1753_v28 = vshrl.u32 %v3576_v53, 16  ;;  %v269_v39 = vld [vmem:[#allocation2 + $0xa4] sm:$0x1]  ;;  %v305_v40 = vld [vmem:[%s3422_s28 + $0x60] sm:$0xf] }
  0x53   : > { %v414_v25 = vor.u32 %v412_v44, %v411_v18  ;;  %v416_v26 = vrot.slane %v411_v18, 4  ;;  %v1757_v29 = vrot.slane %v1755_v10, 1  ;;  %v1760_v17 = vshll.u32 %v3592_v47, 16  ;;  %v306_v45 = vld [vmem:[%s3422_s28 + $0x64] sm:$0xf] }
  0x54   : > { %v1250_v19 = vsel %vm1070_vm6, %v1245_v12, %v1249_v4  ;;  %v2191_v36 = vsel %vm1070_vm6, %v2186_v16, %v2190_v21  ;;  %v2975_v42 = vcombine.low %v875_v24, %v3560_v31  ;;  %v3617_v50 = vcombine.low %v906_v63, %v3604_v34  ;;  %v825_v54 = vld [vmem:[#allocation2 + $0x54] sm:$0xf]  ;;  %v3627_v60 = vld [vmem:[#allocation2 + $0x58] sm:$0xf]  ;;  %v940_v8 = vld [vmem:[#allocation2 + $0xc0] sm:$0xe] }
  0x55   : > { %1291 = vrot.lane.b32.xlu1 %v1250_v19, %s3320_s8  ;;  %v415_v30 = vsel %vm3445_vm10, %v407_v23, %v414_v25  ;;  %v672_v33 = vld [vmem:[#allocation2 + $0x48] sm:$0xf]  ;;  %v1758_v49 = vor.u32 %v1757_v29, %v1753_v28  ;;  %v1762_v2 = vrot.slane %v1760_v17, 1  ;;  %v220_v51 = vsel %vm3396_vm3, 0, %v219_v35  ;;  %v195_v24 = vld [vmem:[#allocation2 + $0x3c] sm:$0x1] }
  0x56   : > { %1790 = vrot.lane.b32.xlu0 %v1679_v15, %s3321_s9  ;;  %v673_v37 = vsel %vm3436_vm9, %v406_v22, %v672_v33  ;;  %675 = vst.msk [vmem:[#allocation2 + $0x4c] sm:$0xf] %vm170_vm0, %v415_v30  ;;  %v676_v38 = vld [vmem:[#allocation2 + $0x50] sm:$0x1]  ;;  %221 = vst [vmem:[#allocation2 + $0x9c] sm:$0x1] %v220_v51  ;;  %v3638_v44 = vcombine.low %v825_v54, %v3627_v60  ;;  %v3023_v28 = vcombine.low %v940_v8, %v3604_v34 }
  0x57   : > { %674 = vst [vmem:[#allocation2 + $0x48] sm:$0xf] %v673_v37  ;;  %v677_v43 = vsel %vm3396_vm3, %v416_v26, %v676_v38  ;;  %v270_v31 = vsel %vm3402_vm5, 0, %v269_v39  ;;  %v520_v52 = vshrl.u32 %v305_v40, 16  ;;  %v523_v55 = vshll.u32 %v305_v40, 16 }
  0x58   : > { %678 = vst [vmem:[#allocation2 + $0x50] sm:$0x1] %v677_v43  ;;  %271 = vst [vmem:[#allocation2 + $0xa4] sm:$0x1] %v270_v31  ;;  %v528_v56 = vshrl.u32 %v306_v45, 16  ;;  %v531_v57 = vshll.u32 %v306_v45, 16  ;;  %v1763_v62 = vsel %vm1070_vm6, %v1758_v49, %v1762_v2 }
  0x59   : > { %1420 = vrot.lane.b32.xlu1 %v1388_v27, %s3319_s7  ;;  %v1898_v58 = vrot.slane %v2975_v42, 1  ;;  %v1899_v59 = vrot.slane %v3592_v47, 1  ;;  %v522_v61 = vrot.slane %v520_v52, 7  ;;  %v2267_v0 = vshll.u32 %v3617_v50, 16  ;;  %v245_v30 = vld [vmem:[#allocation2 + $0x44] sm:$0x1] }
  0x5a   : > { %2302 = vrot.lane.b32.xlu0 %v2191_v36, %s3316_s4  ;;  %v3631_v20 = vld [vmem:[#allocation2 + $0xc8] ss:$0 sps:$4 sm:$0x11]   ;;  %v530_v4 = vrot.slane %v528_v56, 7  ;;  %v2265_v15 = vshrl.u32 %v3617_v50, 16  ;;  %v1659_v37 = vshll.u32 %v3638_v44, 16 }
  0x5b   : > { %v526_v9 = vrot.slane %v522_v61, 4  ;;  %v525_v11 = vor.u32 %v523_v55, %v522_v61  ;;  %v1900_v14 = vsel %vm1343_vm7, %v1898_v58, %v1899_v59  ;;  %v2269_v18 = vrot.slane %v2267_v0, 1  ;;  %v3642_v21 = vld [vmem:[#allocation2 + $0x5c] ss:$0 sps:$4 sm:$0x11]  }
  0x5c   : > { %v535_v12 = vrot.slane %v530_v4, 4  ;;  %v2272_v19 = vshll.u32 %v3631_v20, 16  ;;  %v289_v33 = vld [vmem:[%s3422_s28 + $0x20] sm:$0xf]  ;;  %v1657_v38 = vshrl.u32 %v3638_v44, 16  ;;  %v196_v43 = vsel %vm3396_vm3, 0, %v195_v24 }
  0x5d   : > { %1532 = vrot.lane.b32.xlu1 %v3576_v53, %s3317_s5  ;;  %v762_v5 = vld [vmem:[#allocation2 + $0x4c] sm:$0xf]  ;;  %v533_v53 = vor.u32 %v531_v57, %v530_v4  ;;  %v721_v23 = vld [vmem:[#allocation2 + $0x9c] sm:$0xf]  ;;  %v290_v39 = vld [vmem:[%s3422_s28 + $0x24] sm:$0xf]  ;;  %v2270_v40 = vor.u32 %v2269_v18, %v2265_v15 }
  0x5e   : > { %v761_v10 = vld [vmem:[#allocation2 + $0x48] sm:$0xf]  ;;  %v722_v29 = vsel %vm3436_vm9, %v525_v11, %v721_v23  ;;  %v2274_v42 = vrot.slane %v2272_v19, 1  ;;  %v867_v2 = vld [vmem:[#allocation2 + $0x54] sm:$0xe]  ;;  %v246_v31 = vsel %vm3402_vm5, 0, %v245_v30 }
  0x5f   : > { %v803_v6 = vld [vmem:[#allocation2 + $0x48] sm:$0xe]  ;;  %v3634_v13 = vcombine.low %v761_v10, %v762_v5  ;;  %v3133_v47 = vld [vmem:[#allocation2 + $0x50] ss:$0 sps:$4 sm:$0x11]   ;;  %v534_v22 = vsel %vm3445_vm10, %v526_v9, %v533_v53  ;;  %v384_v52 = vshrl.u32 %v289_v33, 16 }
  0x60   : > { %v2919_v16 = vcombine.low %v803_v6, %v762_v5  ;;  %v1151_v63 = vshll.u32 %v3133_v47, 16  ;;  %724 = vst.msk [vmem:[#allocation2 + $0xa0] sm:$0xf] %vm170_vm0, %v534_v22  ;;  %v725_v27 = vld [vmem:[#allocation2 + $0xa4] sm:$0x1]  ;;  %v1363_v49 = vrot.slane %v3133_v47, 1  ;;  %v2275_v4 = vsel %vm1070_vm6, %v2270_v40, %v2274_v42 }
  0x61   : > { %1804 = vrot.lane.b32.xlu1 %v1763_v62, %s3321_s9  ;;  %v1144_v25 = vshrl.u32 %v3634_v13, 16  ;;  %v1146_v26 = vshll.u32 %v3634_v13, 16  ;;  %v726_v17 = vsel %vm3396_vm3, %v535_v12, %v725_v27  ;;  %723 = vst [vmem:[#allocation2 + $0x9c] sm:$0xf] %v722_v29  ;;  %v890_v51 = vld [vmem:[#allocation2 + $0x60] sm:$0xf]  ;;  %v2967_v12 = vcombine.low %v867_v2, %v3627_v60 }
  0x62   : > { %v1153_v36 = vrot.slane %v1151_v63, 1  ;;  %727 = vst [vmem:[#allocation2 + $0xa4] sm:$0x1] %v726_v17  ;;  %v1362_v34 = vrot.slane %v2919_v16, 1  ;;  %197 = vst [vmem:[#allocation2 + $0x3c] sm:$0x1] %v196_v43 }
  0x63   : > { %v1148_v35 = vrot.slane %v1146_v26, 1  ;;  %v1664_v54 = vshll.u32 %v3642_v21, 16  ;;  %247 = vst [vmem:[#allocation2 + $0x44] sm:$0x1] %v246_v31  ;;  %v387_v55 = vshll.u32 %v289_v33, 16  ;;  %v392_v56 = vshrl.u32 %v290_v39, 16 }
  0x64   : > { %v395_v57 = vshll.u32 %v290_v39, 16  ;;  %v1661_v59 = vrot.slane %v1659_v37, 1  ;;  %v2410_v61 = vrot.slane %v3023_v28, 1  ;;  %v3667_v62 = vld [vmem:[#allocation2 + $0x64] sm:$0xf]  ;;  %v386_v0 = vrot.slane %v384_v52, 7 }
  0x65   : > { %1932 = vrot.lane.b32.xlu1 %v1900_v14, %s3318_s6  ;;  %v1149_v45 = vor.u32 %v1148_v35, %v1144_v25  ;;  %v2411_v5 = vrot.slane %v3631_v20, 1  ;;  %v839_v9 = vld [vmem:[#allocation2 + $0xa8] sm:$0xf]  ;;  %v394_v10 = vrot.slane %v392_v56, 7  ;;  %v1364_v6 = vsel %vm1343_vm7, %v1362_v34, %v1363_v49  ;;  %v3675_v53 = vld [vmem:[#allocation2 + $0xac] sm:$0xf] }
  0x66   : > { %v3673_v11 = vld [vmem:[#allocation2 + $0x68] ss:$0 sps:$4 sm:$0x11]   ;;  %v3679_v14 = vcombine.low %v890_v51, %v3667_v62  ;;  %v389_v16 = vor.u32 %v387_v55, %v386_v0  ;;  %v1666_v20 = vrot.slane %v1664_v54, 1  ;;  %v1662_v24 = vor.u32 %v1661_v59, %v1657_v38  ;;  %v932_v34 = vld [vmem:[#allocation2 + $0x60] sm:$0xe] }
  0x67   : > { %v1154_v58 = vsel %vm1070_vm6, %v1149_v45, %v1153_v36  ;;  %v776_v8 = vld [vmem:[#allocation2 + $0xa0] sm:$0xf]  ;;  %v397_v18 = vor.u32 %v395_v57, %v394_v10  ;;  %v399_v23 = vrot.slane %v394_v10, 4  ;;  %v2412_v25 = vsel %vm1343_vm7, %v2410_v61, %v2411_v5  ;;  %v3701_v42 = vld [vmem:[#allocation2 + $0xb0] ss:$0 sps:$4 sm:$0x11]  }
  0x68   : > { %1275 = vrot.lane.b32.xlu0 %v1154_v58, %s3320_s8  ;;  %v775_v47 = vld [vmem:[#allocation2 + $0x9c] sm:$0xf]  ;;  %v3687_v60 = vcombine.low %v839_v9, %v3675_v53  ;;  %v1874_v33 = vrot.slane %v2967_v12, 1  ;;  %v2171_v35 = vshll.u32 %v3679_v14, 16  ;;  %v2176_v40 = vshll.u32 %v3673_v11, 16 }
  0x69   : > { %2044 = vrot.lane.b32.xlu1 %v3617_v50, %s3314_s29  ;;  %v390_v50 = vrot.slane %v386_v0, 4  ;;  %v810_v15 = vld [vmem:[#allocation2 + $0x9c] sm:$0xe]  ;;  %v3682_v19 = vcombine.low %v775_v47, %v776_v8  ;;  %v3142_v22 = vld [vmem:[#allocation2 + $0xa4] ss:$0 sps:$4 sm:$0x11]   ;;  %v1667_v51 = vsel %vm1070_vm6, %v1662_v24, %v1666_v20 }
  0x6a   : > { %v665_v63 = vld [vmem:[#allocation2 + $0x3c] sm:$0xf]  ;;  %v1235_v29 = vshll.u32 %v3142_v22, 16  ;;  %v2926_v17 = vcombine.low %v810_v15, %v776_v8  ;;  %v669_v30 = vld [vmem:[#allocation2 + $0x44] sm:$0x1]  ;;  %v1875_v43 = vrot.slane %v3642_v21, 1  ;;  %v3015_v8 = vcombine.low %v932_v34, %v3667_v62 }
  0x6b   : > { %v398_v26 = vsel %vm3445_vm10, %v390_v50, %v397_v18  ;;  %v1228_v27 = vshrl.u32 %v3682_v19, 16  ;;  %v1230_v28 = vshll.u32 %v3682_v19, 16  ;;  %v666_v36 = vsel %vm3436_vm9, %v389_v16, %v665_v63  ;;  %v216_v49 = vld [vmem:[#allocation2 + $0x90] sm:$0x1]  ;;  %v266_v2 = vld [vmem:[#allocation2 + $0x98] sm:$0x1] }
  0x6c   : > { %1404 = vrot.lane.b32.xlu0 %v1364_v6, %s3319_s7  ;;  %668 = vst.msk [vmem:[#allocation2 + $0x40] sm:$0xf] %vm170_vm0, %v398_v26  ;;  %v670_v37 = vsel %vm3396_vm3, %v399_v23, %v669_v30  ;;  %v1237_v39 = vrot.slane %v1235_v29, 1  ;;  %667 = vst [vmem:[#allocation2 + $0x3c] sm:$0xf] %v666_v36  ;;  %v1743_v45 = vshll.u32 %v3687_v60, 16  ;;  %v1876_v5 = vsel %vm1343_vm7, %v1874_v33, %v1875_v43 }
  0x6d   : > { %2316 = vrot.lane.b32.xlu1 %v2275_v4, %s3316_s4  ;;  %v1232_v38 = vrot.slane %v1230_v28, 1  ;;  %671 = vst [vmem:[#allocation2 + $0x44] sm:$0x1] %v670_v37  ;;  %v1383_v52 = vrot.slane %v2926_v17, 1  ;;  %v1384_v54 = vrot.slane %v3142_v22, 1  ;;  %v2169_v56 = vshrl.u32 %v3679_v14, 16 }
  0x6e   : > { %v303_v55 = vld [vmem:[%s3422_s28 + $0x58] sm:$0xf]  ;;  %v2173_v57 = vrot.slane %v2171_v35, 1  ;;  %v874_v58 = vld [vmem:[#allocation2 + $0xa8] sm:$0xe]  ;;  %v217_v21 = vsel %vm3396_vm3, 0, %v216_v49 }
  0x6f   : > { %v1233_v31 = vor.u32 %v1232_v38, %v1228_v27  ;;  %v304_v59 = vld [vmem:[%s3422_s28 + $0x5c] sm:$0xf]  ;;  %v904_v0 = vld [vmem:[#allocation2 + $0xb4] sm:$0xf]  ;;  %v267_v4 = vsel %vm3402_vm5, 0, %v266_v2  ;;  %v1741_v9 = vshrl.u32 %v3687_v60, 16  ;;  %v1385_v12 = vsel %vm1343_vm7, %v1383_v52, %v1384_v54 }
  0x70   : > { %1516 = vrot.lane.b32.xlu0 %v3638_v44, %s3317_s5  ;;  %v2178_v44 = vrot.slane %v2176_v40, 1  ;;  %v3723_v6 = vld [vmem:[#allocation2 + $0xb8] sm:$0xf]  ;;  %218 = vst [vmem:[#allocation2 + $0x90] sm:$0x1] %v217_v21  ;;  %v503_v50 = vshrl.u32 %v303_v55, 16  ;;  %v2174_v18 = vor.u32 %v2173_v57, %v2169_v56  ;;  %v2974_v20 = vcombine.low %v874_v58, %v3675_v53 }
  0x71   : > { %2444 = vrot.lane.b32.xlu1 %v2412_v25, %s3315_s30  ;;  %v1238_v61 = vsel %vm1070_vm6, %v1233_v31, %v1237_v39  ;;  %268 = vst [vmem:[#allocation2 + $0x98] sm:$0x1] %v267_v4  ;;  %v1745_v47 = vrot.slane %v1743_v45, 1  ;;  %v1748_v15 = vshll.u32 %v3701_v42, 16  ;;  %v511_v16 = vshrl.u32 %v304_v59, 16 }
  0x72   : > { %v506_v62 = vshll.u32 %v303_v55, 16  ;;  %v514_v23 = vshll.u32 %v304_v59, 16  ;;  %v3732_v25 = vcombine.low %v904_v0, %v3723_v6  ;;  %v505_v26 = vrot.slane %v503_v50, 7  ;;  %v823_v33 = vld [vmem:[#allocation2 + $0x48] sm:$0xf] }
  0x73   : > { %v3721_v10 = vld [vmem:[#allocation2 + $0x40] sm:$0xf]  ;;  %v759_v22 = vld [vmem:[#allocation2 + $0x3c] sm:$0xf]  ;;  %v513_v63 = vrot.slane %v511_v16, 7  ;;  %v2386_v27 = vrot.slane %v3015_v8, 1  ;;  %v1746_v53 = vor.u32 %v1745_v47, %v1741_v9  ;;  %v2179_v40 = vsel %vm1070_vm6, %v2174_v18, %v2178_v44 }
  0x74   : > { %1788 = vrot.lane.b32.xlu0 %v1667_v51, %s3321_s9  ;;  %v3729_v24 = vcombine.low %v759_v22, %v3721_v10  ;;  %v2387_v28 = vrot.slane %v3673_v11, 1  ;;  %v3737_v29 = vld [vmem:[#allocation2 + $0x44] ss:$0 sps:$4 sm:$0x11]   ;;  %v1750_v17 = vrot.slane %v1748_v15, 1  ;;  %v1895_v36 = vrot.slane %v2974_v20, 1 }
  0x75   : > { %1289 = vrot.lane.b32.xlu1 %v1238_v61, %s3320_s8  ;;  %v3740_v35 = vld [vmem:[#allocation2 + $0x4c] sm:$0xf]  ;;  %v3742_v37 = vld [vmem:[#allocation2 + $0xbc] ss:$0 sps:$4 sm:$0x11]   ;;  %v508_v38 = vor.u32 %v506_v62, %v505_v26  ;;  %v509_v39 = vrot.slane %v505_v26, 4  ;;  %v516_v34 = vor.u32 %v514_v23, %v513_v63 }
  0x76   : > { %v1134_v30 = vshll.u32 %v3729_v24, 16  ;;  %v2255_v43 = vshll.u32 %v3732_v25, 16  ;;  %v518_v11 = vrot.slane %v513_v63, 4  ;;  %v192_v49 = vld [vmem:[#allocation2 + $0x30] sm:$0x1]  ;;  %v1139_v2 = vshll.u32 %v3737_v29, 16 }
  0x77   : > { %v714_v45 = vld [vmem:[#allocation2 + $0x90] sm:$0xf]  ;;  %v1896_v51 = vrot.slane %v3701_v42, 1  ;;  %v517_v31 = vsel %vm3445_vm10, %v509_v39, %v516_v34  ;;  %v242_v55 = vld [vmem:[#allocation2 + $0x38] sm:$0x1]  ;;  %v1751_v56 = vsel %vm1070_vm6, %v1746_v53, %v1750_v17  ;;  %v2388_v59 = vsel %vm1343_vm7, %v2386_v27, %v2387_v28 }
  0x78   : > { %1916 = vrot.lane.b32.xlu0 %v1876_v5, %s3318_s6  ;;  %v715_v52 = vsel %vm3436_vm9, %v508_v38, %v714_v45  ;;  %v718_v54 = vld [vmem:[#allocation2 + $0x98] sm:$0x1]  ;;  %v1136_v57 = vrot.slane %v1134_v30, 1  ;;  %v802_v58 = vld [vmem:[#allocation2 + $0x3c] sm:$0xe]  ;;  %v3764_v61 = vcombine.low %v823_v33, %v3740_v35  ;;  %v2253_v44 = vshrl.u32 %v3732_v25, 16 }
  0x79   : > { %1418 = vrot.lane.b32.xlu1 %v1385_v12, %s3319_s7  ;;  %716 = vst [vmem:[#allocation2 + $0x90] sm:$0xf] %v715_v52  ;;  %717 = vst.msk [vmem:[#allocation2 + $0x94] sm:$0xf] %vm170_vm0, %v517_v31  ;;  %v287_v42 = vld [vmem:[%s3422_s28 + $0x18] sm:$0xf]  ;;  %v1897_v50 = vsel %vm1343_vm7, %v1895_v36, %v1896_v51  ;;  %v2918_v12 = vcombine.low %v802_v58, %v3721_v10 }
  0x7a   : > { %v288_v0 = vld [vmem:[%s3422_s28 + $0x1c] sm:$0xf]  ;;  %v2257_v21 = vrot.slane %v2255_v43, 1  ;;  %v2260_v4 = vshll.u32 %v3742_v37, 16  ;;  %v193_v5 = vsel %vm3396_vm3, 0, %v192_v49  ;;  %v243_v8 = vsel %vm3402_vm5, 0, %v242_v55 }
  0x7b   : > { %v1141_v9 = vrot.slane %v1139_v2, 1  ;;  %v939_v47 = vld [vmem:[#allocation2 + $0xb4] sm:$0xe]  ;;  %194 = vst [vmem:[#allocation2 + $0x30] sm:$0x1] %v193_v5  ;;  %v367_v15 = vshrl.u32 %v287_v42, 16 }
  0x7c   : > { %2028 = vrot.lane.b32.xlu0 %v3679_v14, %s3314_s29  ;;  %v1132_v14 = vshrl.u32 %v3729_v24, 16  ;;  %244 = vst [vmem:[#allocation2 + $0x38] sm:$0x1] %v243_v8  ;;  %v370_v18 = vshll.u32 %v287_v42, 16  ;;  %v375_v20 = vshrl.u32 %v288_v0, 16  ;;  %v378_v22 = vshll.u32 %v288_v0, 16 }
  0x7d   : > { %1530 = vrot.lane.b32.xlu1 %v3687_v60, %s3317_s5  ;;  %v719_v60 = vsel %vm3396_vm3, %v518_v11, %v718_v54  ;;  %v1647_v62 = vshll.u32 %v3764_v61, 16  ;;  %v3778_v23 = vld [vmem:[#allocation2 + $0x50] ss:$0 sps:$4 sm:$0x11]   ;;  %v369_v26 = vrot.slane %v367_v15, 7  ;;  %v3022_v63 = vcombine.low %v939_v47, %v3723_v6 }
  0x7e   : > { %720 = vst [vmem:[#allocation2 + $0x98] sm:$0x1] %v719_v60  ;;  %v1137_v16 = vor.u32 %v1136_v57, %v1132_v14  ;;  %v2258_v27 = vor.u32 %v2257_v21, %v2253_v44  ;;  %v2262_v28 = vrot.slane %v2260_v4, 1  ;;  %v377_v53 = vrot.slane %v375_v20, 7  ;;  %v866_v39 = vld [vmem:[#allocation2 + $0x48] sm:$0xe] }
  0x7f   : > { %v1359_v10 = vrot.slane %v2918_v12, 1  ;;  %v1360_v17 = vrot.slane %v3737_v29, 1  ;;  %v372_v36 = vor.u32 %v370_v18, %v369_v26  ;;  %v1645_v11 = vshrl.u32 %v3764_v61, 16  ;;  %v888_v29 = vld [vmem:[#allocation2 + $0x54] sm:$0xf] }
  0x80   : > { %2300 = vrot.lane.b32.xlu0 %v2179_v40, %s3316_s4  ;;  %v773_v30 = vld [vmem:[#allocation2 + $0x90] sm:$0xf]  ;;  %v3784_v33 = vld [vmem:[#allocation2 + $0x94] sm:$0xf]  ;;  %v1142_v38 = vsel %vm1070_vm6, %v1137_v16, %v1141_v9  ;;  %v373_v40 = vrot.slane %v369_v26, 4  ;;  %v380_v43 = vor.u32 %v378_v22, %v377_v53  ;;  %v1649_v45 = vrot.slane %v1647_v62, 1 }
  0x81   : > { %1802 = vrot.lane.b32.xlu1 %v1751_v56, %s3321_s9  ;;  %v3788_v34 = vcombine.low %v773_v30, %v3784_v33  ;;  %v1652_v49 = vshll.u32 %v3778_v23, 16  ;;  %v3794_v2 = vld [vmem:[#allocation2 + $0x58] sm:$0xf]  ;;  %v382_v51 = vrot.slane %v377_v53, 4  ;;  %v2263_v31 = vsel %vm1070_vm6, %v2258_v27, %v2262_v28  ;;  %v837_v57 = vld [vmem:[#allocation2 + $0x9c] sm:$0xf] }
  0x82   : > { %v2407_v52 = vrot.slane %v3022_v63, 1  ;;  %v2408_v54 = vrot.slane %v3742_v37, 1  ;;  %v658_v56 = vld [vmem:[#allocation2 + $0x30] sm:$0xf]  ;;  %v1361_v14 = vsel %vm1343_vm7, %v1359_v10, %v1360_v17  ;;  %v3803_v58 = vld [vmem:[#allocation2 + $0xa0] sm:$0xf]  ;;  %v381_v60 = vsel %vm3445_vm10, %v373_v40, %v380_v43 }
  0x83   : > { %v1218_v55 = vshll.u32 %v3788_v34, 16  ;;  %v659_v37 = vsel %vm3436_vm9, %v372_v36, %v658_v56  ;;  %v662_v42 = vld [vmem:[#allocation2 + $0x38] sm:$0x1]  ;;  %v809_v21 = vld [vmem:[#allocation2 + $0x90] sm:$0xe]  ;;  %v2966_v4 = vcombine.low %v866_v39, %v3740_v35  ;;  %v3816_v8 = vcombine.low %v888_v29, %v3794_v2 }
  0x84   : > { %2428 = vrot.lane.b32.xlu0 %v2388_v59, %s3315_s30  ;;  %v1216_v59 = vshrl.u32 %v3788_v34, 16  ;;  %660 = vst [vmem:[#allocation2 + $0x30] sm:$0xf] %v659_v37  ;;  %661 = vst.msk [vmem:[#allocation2 + $0x34] sm:$0xf] %vm170_vm0, %v381_v60  ;;  %v3819_v9 = vcombine.low %v837_v57, %v3803_v58  ;;  %v1650_v47 = vor.u32 %v1649_v45, %v1645_v11  ;;  %v1654_v15 = vrot.slane %v1652_v49, 1 }
  0x85   : > { %1930 = vrot.lane.b32.xlu1 %v1897_v50, %s3318_s6  ;;  %v3790_v6 = vld [vmem:[#allocation2 + $0x98] ss:$0 sps:$4 sm:$0x11]   ;;  %v1220_v44 = vrot.slane %v1218_v55, 1  ;;  %v213_v5 = vld [vmem:[#allocation2 + $0x84] sm:$0x1]  ;;  %v2925_v16 = vcombine.low %v809_v21, %v3784_v33  ;;  %v2409_v35 = vsel %vm1343_vm7, %v2407_v52, %v2408_v54 }
  0x86   : > { %v1223_v0 = vshll.u32 %v3790_v6, 16  ;;  %v263_v50 = vld [vmem:[#allocation2 + $0x8c] sm:$0x1]  ;;  %v301_v12 = vld [vmem:[%s3422_s28 + $0x50] sm:$0xf]  ;;  %v214_v62 = vsel %vm3396_vm3, 0, %v213_v5  ;;  %v1655_v40 = vsel %vm1070_vm6, %v1650_v47, %v1654_v15 }
  0x87   : > { %v302_v18 = vld [vmem:[%s3422_s28 + $0x54] sm:$0xf]  ;;  %v1221_v20 = vor.u32 %v1220_v44, %v1216_v59  ;;  %v1871_v26 = vrot.slane %v2966_v4, 1  ;;  %v1872_v63 = vrot.slane %v3778_v23, 1  ;;  %215 = vst [vmem:[#allocation2 + $0x84] sm:$0x1] %v214_v62 }
  0x88   : > { %1273 = vrot.lane.b32.xlu0 %v1142_v38, %s3320_s8  ;;  %v1225_v22 = vrot.slane %v1223_v0, 1  ;;  %v264_v27 = vsel %vm3402_vm5, 0, %v263_v50  ;;  %v486_v28 = vshrl.u32 %v301_v12, 16  ;;  %v2159_v53 = vshll.u32 %v3816_v8, 16  ;;  %v931_v33 = vld [vmem:[#allocation2 + $0x54] sm:$0xe] }
  0x89   : > { %2042 = vrot.lane.b32.xlu1 %v3732_v25, %s3314_s29  ;;  %v663_v25 = vsel %vm3396_vm3, %v382_v51, %v662_v42  ;;  %v3833_v10 = vld [vmem:[#allocation2 + $0x5c] ss:$0 sps:$4 sm:$0x11]   ;;  %v1731_v17 = vshll.u32 %v3819_v9, 16  ;;  %265 = vst [vmem:[#allocation2 + $0x8c] sm:$0x1] %v264_v27  ;;  %v1873_v29 = vsel %vm1343_vm7, %v1871_v26, %v1872_v63  ;;  %v3014_v59 = vcombine.low %v931_v33, %v3794_v2 }
  0x8a   : > { %664 = vst [vmem:[#allocation2 + $0x38] sm:$0x1] %v663_v25  ;;  %v494_v30 = vshrl.u32 %v302_v18, 16  ;;  %v1380_v23 = vrot.slane %v2925_v16, 1  ;;  %v489_v38 = vshll.u32 %v301_v12, 16  ;;  %v497_v39 = vshll.u32 %v302_v18, 16 }
  0x8b   : > { %v3839_v36 = vld [vmem:[#allocation2 + $0xa4] ss:$0 sps:$4 sm:$0x11]   ;;  %v1226_v43 = vsel %vm1070_vm6, %v1221_v20, %v1225_v22  ;;  %v1381_v11 = vrot.slane %v3790_v6, 1  ;;  %v757_v45 = vld [vmem:[#allocation2 + $0x30] sm:$0xf] }
  0x8c   : > { %1402 = vrot.lane.b32.xlu0 %v1361_v14, %s3319_s7  ;;  %v488_v49 = vrot.slane %v486_v28, 7  ;;  %v3846_v51 = vld [vmem:[#allocation2 + $0x34] sm:$0xf]  ;;  %v2161_v52 = vrot.slane %v2159_v53, 1  ;;  %v2164_v54 = vshll.u32 %v3833_v10, 16  ;;  %v1729_v56 = vshrl.u32 %v3819_v9, 16 }
  0x8d   : > { %2314 = vrot.lane.b32.xlu1 %v2263_v31, %s3316_s4  ;;  %v496_v31 = vrot.slane %v494_v30, 7  ;;  %v873_v55 = vld [vmem:[#allocation2 + $0x9c] sm:$0xe]  ;;  %v1733_v14 = vrot.slane %v1731_v17, 1  ;;  %v1736_v6 = vshll.u32 %v3839_v36, 16  ;;  %v1382_v44 = vsel %vm1343_vm7, %v1380_v23, %v1381_v11 }
  0x8e   : > { %v902_v57 = vld [vmem:[#allocation2 + $0xa8] sm:$0xf]  ;;  %v491_v60 = vor.u32 %v489_v38, %v488_v49  ;;  %v492_v37 = vrot.slane %v488_v49, 4  ;;  %v3856_v0 = vcombine.low %v757_v45, %v3846_v51  ;;  %v3858_v21 = vld [vmem:[#allocation2 + $0xac] sm:$0xf]  ;;  %v2973_v5 = vcombine.low %v873_v55, %v3803_v58 }
  0x8f   : > { %v499_v42 = vor.u32 %v497_v39, %v496_v31  ;;  %v501_v25 = vrot.slane %v496_v31, 4  ;;  %v707_v4 = vld [vmem:[#allocation2 + $0x84] sm:$0xf]  ;;  %v2166_v15 = vrot.slane %v2164_v54, 1  ;;  %v239_v18 = vld [vmem:[#allocation2 + $0x2c] sm:$0x1]  ;;  %v1734_v20 = vor.u32 %v1733_v14, %v1729_v56 }
  0x90   : > { %1514 = vrot.lane.b32.xlu0 %v3764_v61, %s3317_s5  ;;  %v2157_v61 = vshrl.u32 %v3816_v8, 16  ;;  %v708_v12 = vsel %vm3436_vm9, %v491_v60, %v707_v4  ;;  %v711_v2 = vld [vmem:[#allocation2 + $0x8c] sm:$0x1]  ;;  %v189_v47 = vld [vmem:[#allocation2 + $0x24] sm:$0x1]  ;;  %v1738_v22 = vrot.slane %v1736_v6, 1  ;;  %v3872_v62 = vcombine.low %v902_v57, %v3858_v21 }
  0x91   : > { %2442 = vrot.lane.b32.xlu1 %v2409_v35, %s3315_s30  ;;  %v500_v50 = vsel %vm3445_vm10, %v492_v37, %v499_v42  ;;  %709 = vst [vmem:[#allocation2 + $0x84] sm:$0xf] %v708_v12  ;;  %v712_v16 = vsel %vm3396_vm3, %v501_v25, %v711_v2  ;;  %v285_v35 = vld [vmem:[%s3422_s28 + $0x10] sm:$0xf]  ;;  %v286_v26 = vld [vmem:[%s3422_s28 + $0x14] sm:$0xf] }
  0x92   : > { %710 = vst.msk [vmem:[#allocation2 + $0x88] sm:$0xf] %vm170_vm0, %v500_v50  ;;  %v2162_v58 = vor.u32 %v2161_v52, %v2157_v61  ;;  %713 = vst [vmem:[#allocation2 + $0x8c] sm:$0x1] %v712_v16  ;;  %v2383_v63 = vrot.slane %v3014_v59, 1  ;;  %v1122_v28 = vshll.u32 %v3856_v0, 16  ;;  %v3881_v33 = vpop.permute.xlu1 %2046 }
  0x93   : > { %v3875_v27 = vld [vmem:[#allocation2 + $0x38] ss:$0 sps:$4 sm:$0x11]   ;;  %v190_v53 = vsel %vm3396_vm3, 0, %v189_v47  ;;  %v2384_v17 = vrot.slane %v3833_v10, 1  ;;  %v1892_v30 = vrot.slane %v2973_v5, 1 }
  0x94   : > { %1786 = vrot.lane.b32.xlu0 %v1655_v40, %s3321_s9  ;;  %v821_v23 = vld [vmem:[#allocation2 + $0x3c] sm:$0xf]  ;;  %191 = vst [vmem:[#allocation2 + $0x24] sm:$0x1] %v190_v53  ;;  %v240_v38 = vsel %vm3402_vm5, 0, %v239_v18  ;;  %v350_v39 = vshrl.u32 %v285_v35, 16  ;;  %v2167_v10 = vsel %vm1070_vm6, %v2162_v58, %v2166_v15 }
  0x95   : > { %1287 = vrot.lane.b32.xlu1 %v1226_v43, %s3320_s8  ;;  %v1893_v40 = vrot.slane %v3839_v36, 1  ;;  %v3886_v43 = vld [vmem:[#allocation2 + $0x40] sm:$0xf]  ;;  %241 = vst [vmem:[#allocation2 + $0x2c] sm:$0x1] %v240_v38  ;;  %v353_v11 = vshll.u32 %v285_v35, 16  ;;  %v2385_v60 = vsel %vm1343_vm7, %v2383_v63, %v2384_v17 }
  0x96   : > { %v358_v45 = vshrl.u32 %v286_v26, 16  ;;  %v361_v49 = vshll.u32 %v286_v26, 16  ;;  %v2243_v61 = vshll.u32 %v3872_v62, 16  ;;  %v3895_v31 = vld [vmem:[#allocation2 + $0xb0] ss:$0 sps:$4 sm:$0x11]   ;;  %v3908_v25 = vpop.permute.xlu1 %2446 }
  0x97   : > { %v352_v36 = vrot.slane %v350_v39, 7  ;;  %v1120_v52 = vshrl.u32 %v3856_v0, 16  ;;  %v1124_v54 = vrot.slane %v1122_v28, 1  ;;  %v1127_v55 = vshll.u32 %v3875_v27, 16  ;;  %v801_v14 = vld [vmem:[#allocation2 + $0x30] sm:$0xe] }
  0x98   : > { %1914 = vrot.lane.b32.xlu0 %v1873_v29, %s3318_s6  ;;  %v1739_v29 = vsel %vm1070_vm6, %v1734_v20, %v1738_v22  ;;  %v360_v56 = vrot.slane %v358_v45, 7  ;;  %v771_v6 = vld [vmem:[#allocation2 + $0x84] sm:$0xf]  ;;  %v1894_v37 = vsel %vm1343_vm7, %v1892_v30, %v1893_v40  ;;  %v2241_v4 = vshrl.u32 %v3872_v62, 16  ;;  %v865_v28 = vld [vmem:[#allocation2 + $0x3c] sm:$0xe] }
  0x99   : > { %1416 = vrot.lane.b32.xlu1 %v1382_v44, %s3319_s7  ;;  %v3902_v57 = vld [vmem:[#allocation2 + $0x88] sm:$0xf]  ;;  %v356_v42 = vrot.slane %v352_v36, 4  ;;  %v2245_v5 = vrot.slane %v2243_v61, 1  ;;  %v2248_v50 = vshll.u32 %v3895_v31, 16  ;;  %v1125_v2 = vor.u32 %v1124_v54, %v1120_v52 }
  0x9a   : > { %v363_v59 = vor.u32 %v361_v49, %v360_v56  ;;  %v938_v44 = vld [vmem:[#allocation2 + $0xa8] sm:$0xe]  ;;  %v365_v12 = vrot.slane %v360_v56, 4  ;;  %v1129_v47 = vrot.slane %v1127_v55, 1  ;;  %v2917_v15 = vcombine.low %v801_v14, %v3846_v51  ;;  %v3931_v38 = vld [vmem:[#allocation2 + $0x4c] sm:$0xf] }
  0x9b   : > { %v3913_v16 = vld [vmem:[#allocation2 + $0x44] ss:$0 sps:$4 sm:$0x11]   ;;  %v3916_v18 = vcombine.low %v771_v6, %v3902_v57  ;;  %v3021_v63 = vcombine.low %v938_v44, %v3858_v21  ;;  %v886_v53 = vld [vmem:[#allocation2 + $0x48] sm:$0xf]  ;;  %v2246_v17 = vor.u32 %v2245_v5, %v2241_v4  ;;  %v2250_v30 = vrot.slane %v2248_v50, 1 }
  0x9c   : > { %2026 = vrot.lane.b32.xlu0 %v3816_v8, %s3314_s29  ;;  %v3900_v8 = vcombine.low %v821_v23, %v3886_v43  ;;  %v651_v35 = vld [vmem:[#allocation2 + $0x24] sm:$0xf]  ;;  %v364_v20 = vsel %vm3445_vm10, %v356_v42, %v363_v59  ;;  %v655_v26 = vld [vmem:[#allocation2 + $0x2c] sm:$0x1]  ;;  %v1130_v21 = vsel %vm1070_vm6, %v1125_v2, %v1129_v47  ;;  %v1356_v39 = vrot.slane %v2917_v15, 1 }
  0x9d   : > { %1528 = vrot.lane.b32.xlu1 %v3819_v9, %s3317_s5  ;;  %v355_v9 = vor.u32 %v353_v11, %v352_v36  ;;  %654 = vst.msk [vmem:[#allocation2 + $0x28] sm:$0xf] %vm170_vm0, %v364_v20  ;;  %v656_v51 = vsel %vm3396_vm3, %v365_v12, %v655_v26  ;;  %v3929_v23 = vld [vmem:[#allocation2 + $0x8c] ss:$0 sps:$4 sm:$0x11]   ;;  %v1357_v40 = vrot.slane %v3875_v27, 1  ;;  %v2965_v36 = vcombine.low %v865_v28, %v3886_v43 }
  0x9e   : > { %v1635_v58 = vshll.u32 %v3900_v8, 16  ;;  %657 = vst [vmem:[#allocation2 + $0x2c] sm:$0x1] %v656_v51  ;;  %v1206_v11 = vshll.u32 %v3916_v18, 16  ;;  %v1633_v45 = vshrl.u32 %v3900_v8, 16  ;;  %v2404_v52 = vrot.slane %v3021_v63, 1 }
  0x9f   : > { %v652_v22 = vsel %vm3436_vm9, %v355_v9, %v651_v35  ;;  %v210_v61 = vld [vmem:[#allocation2 + $0x78] sm:$0x1]  ;;  %v2405_v54 = vrot.slane %v3895_v31, 1  ;;  %v3943_v55 = vcombine.low %v886_v53, %v3931_v38  ;;  %v835_v27 = vld [vmem:[#allocation2 + $0x90] sm:$0xf]  ;;  %v1204_v56 = vshrl.u32 %v3916_v18, 16 }
  0xa0   : > { %2298 = vrot.lane.b32.xlu0 %v2167_v10, %s3316_s4  ;;  %653 = vst [vmem:[#allocation2 + $0x24] sm:$0xf] %v652_v22  ;;  %v1637_v49 = vrot.slane %v1635_v58, 1  ;;  %v1640_v10 = vshll.u32 %v3913_v16, 16  ;;  %v1211_v14 = vshll.u32 %v3929_v23, 16  ;;  %v1358_v9 = vsel %vm1343_vm7, %v1356_v39, %v1357_v40 }
  0xa1   : > { %1800 = vrot.lane.b32.xlu1 %v1739_v29, %s3321_s9  ;;  %v3938_v29 = vpop.permute.xlu1 %2318  ;;  %v3950_v6 = vld [vmem:[#allocation2 + $0x94] sm:$0xf]  ;;  %v260_v43 = vld [vmem:[#allocation2 + $0x80] sm:$0x1]  ;;  %v2251_v31 = vsel %vm1070_vm6, %v2246_v17, %v2250_v30  ;;  %v211_v42 = vsel %vm3396_vm3, 0, %v210_v61  ;;  %v1868_v12 = vrot.slane %v2965_v36, 1  ;;  %v2406_v63 = vsel %vm1343_vm7, %v2404_v52, %v2405_v54 }
  0xa2   : > { %v299_v59 = vld [vmem:[%s3422_s28 + $0x48] sm:$0xf]  ;;  %v300_v44 = vld [vmem:[%s3422_s28 + $0x4c] sm:$0xf]  ;;  %v1642_v4 = vrot.slane %v1640_v10, 1  ;;  %v2147_v2 = vshll.u32 %v3943_v55, 16  ;;  %v3964_v47 = vcombine.low %v835_v27, %v3950_v6 }
  0xa3   : > { %v808_v5 = vld [vmem:[#allocation2 + $0x84] sm:$0xe]  ;;  %v3960_v50 = vld [vmem:[#allocation2 + $0x50] ss:$0 sps:$4 sm:$0x11]   ;;  %v261_v15 = vsel %vm3402_vm5, 0, %v260_v43 }
  0xa4   : > { %2426 = vrot.lane.b32.xlu0 %v2385_v60, %s3315_s30  ;;  %212 = vst [vmem:[#allocation2 + $0x78] sm:$0x1] %v211_v42  ;;  %262 = vst [vmem:[#allocation2 + $0x80] sm:$0x1] %v261_v15  ;;  %v469_v58 = vshrl.u32 %v299_v59, 16  ;;  %v472_v20 = vshll.u32 %v299_v59, 16  ;;  %v2924_v51 = vcombine.low %v808_v5, %v3902_v57 }
  0xa5   : > { %1928 = vrot.lane.b32.xlu1 %v1894_v37, %s3318_s6  ;;  %v1208_v37 = vrot.slane %v1206_v11, 1  ;;  %v3970_v35 = vpop.permute.xlu1 %1534  ;;  %v477_v22 = vshrl.u32 %v300_v44, 16  ;;  %v480_v26 = vshll.u32 %v300_v44, 16  ;;  %v1213_v53 = vrot.slane %v1211_v14, 1  ;;  %v3978_v11 = vld [vmem:[#allocation2 + $0x48] sm:$0xe] }
  0xa6   : > { %v1869_v30 = vrot.slane %v3913_v16, 1  ;;  %v471_v39 = vrot.slane %v469_v58, 7  ;;  %v2149_v10 = vrot.slane %v2147_v2, 1  ;;  %v2152_v61 = vshll.u32 %v3960_v50, 16  ;;  %v900_v57 = vld [vmem:[#allocation2 + $0x9c] sm:$0xf] }
  0xa7   : > { %v1209_v28 = vor.u32 %v1208_v37, %v1204_v56  ;;  %v479_v40 = vrot.slane %v477_v22, 7  ;;  %v1719_v36 = vshll.u32 %v3964_v47, 16  ;;  %v1717_v16 = vshrl.u32 %v3964_v47, 16  ;;  %v3989_v52 = vld [vmem:[#allocation2 + $0xa0] sm:$0xf] }
  0xa8   : > { %1271 = vrot.lane.b32.xlu0 %v1130_v21, %s3320_s8  ;;  %v3954_v60 = vpop.permute.xlu0 %1518  ;;  %v3976_v21 = vld [vmem:[#allocation2 + $0x98] ss:$0 sps:$4 sm:$0x11]   ;;  %v474_v54 = vor.u32 %v472_v20, %v471_v39  ;;  %v475_v27 = vrot.slane %v471_v39, 4  ;;  %v1377_v43 = vrot.slane %v2924_v51, 1  ;;  %v1870_v2 = vsel %vm1343_vm7, %v1868_v12, %v1869_v30 }
  0xa9   : > { %2040 = vrot.lane.b32.xlu1 %v3872_v62, %s3314_s29  ;;  %v1638_v62 = vor.u32 %v1637_v49, %v1633_v45  ;;  %v2145_v49 = vshrl.u32 %v3943_v55, 16  ;;  %v482_v56 = vor.u32 %v480_v26, %v479_v40  ;;  %v1214_v14 = vsel %vm1070_vm6, %v1209_v28, %v1213_v53  ;;  %v3995_v44 = vld [vmem:[#allocation2 + $0x28] sm:$0xf]  ;;  %v186_v5 = vld [vmem:[#allocation2 + $0x18] sm:$0x1] }
  0xaa   : > { %v484_v37 = vrot.slane %v479_v40, 4  ;;  %v1721_v15 = vrot.slane %v1719_v36, 1  ;;  %v236_v20 = vld [vmem:[#allocation2 + $0x20] sm:$0x1]  ;;  %v3013_v22 = vcombine.low %v3978_v11, %v3931_v38  ;;  %v4009_v26 = vcombine.low %v900_v57, %v3989_v52  ;;  %v819_v12 = vld [vmem:[#allocation2 + $0x30] sm:$0xf] }
  0xab   : > { %v1643_v17 = vsel %vm1070_vm6, %v1638_v62, %v1642_v4  ;;  %v700_v42 = vld [vmem:[#allocation2 + $0x78] sm:$0xf]  ;;  %v483_v62 = vsel %vm3445_vm10, %v475_v27, %v482_v56  ;;  %v704_v58 = vld [vmem:[#allocation2 + $0x80] sm:$0x1]  ;;  %v283_v53 = vld [vmem:[%s3422_s28 + $0x8] sm:$0xf]  ;;  %v2150_v27 = vor.u32 %v2149_v10, %v2145_v49 }
  0xac   : > { %1400 = vrot.lane.b32.xlu0 %v1358_v9, %s3319_s7  ;;  %v1378_v9 = vrot.slane %v3929_v23, 1  ;;  %v701_v4 = vsel %vm3436_vm9, %v474_v54, %v700_v42  ;;  %v1724_v23 = vshll.u32 %v3976_v21, 16  ;;  %703 = vst.msk [vmem:[#allocation2 + $0x7c] sm:$0xf] %vm170_vm0, %v483_v62  ;;  %v705_v28 = vsel %vm3396_vm3, %v484_v37, %v704_v58  ;;  %v284_v40 = vld [vmem:[%s3422_s28 + $0xc] sm:$0xf] }
  0xad   : > { %2312 = vrot.lane.b32.xlu1 %v2251_v31, %s3316_s4  ;;  %v872_v31 = vld [vmem:[#allocation2 + $0x90] sm:$0xe]  ;;  %702 = vst [vmem:[#allocation2 + $0x78] sm:$0xf] %v701_v4  ;;  %706 = vst [vmem:[#allocation2 + $0x80] sm:$0x1] %v705_v28  ;;  %v1722_v37 = vor.u32 %v1721_v15, %v1717_v16 }
  0xae   : > { %v3980_v45 = vpop.permute.xlu0 %2030  ;;  %v1379_v51 = vsel %vm1343_vm7, %v1377_v43, %v1378_v9  ;;  %v187_v38 = vsel %vm3396_vm3, 0, %v186_v5  ;;  %v237_v39 = vsel %vm3402_vm5, 0, %v236_v20  ;;  %v2154_v11 = vrot.slane %v2152_v61, 1  ;;  %v4035_v42 = vld [vmem:[#allocation2 + $0x2c] ss:$0 sps:$4 sm:$0x11]  }
  0xaf   : > { %v2972_v36 = vcombine.low %v872_v31, %v3950_v6  ;;  %188 = vst [vmem:[#allocation2 + $0x18] sm:$0x1] %v187_v38  ;;  %238 = vst [vmem:[#allocation2 + $0x20] sm:$0x1] %v237_v39  ;;  %v333_v57 = vshrl.u32 %v283_v53, 16  ;;  %v336_v54 = vshll.u32 %v283_v53, 16 }
  0xb0   : > { %1512 = vrot.lane.b32.xlu0 %v3900_v8, %s3317_s5  ;;  %v755_v8 = vld [vmem:[#allocation2 + $0x24] sm:$0xf]  ;;  %v344_v43 = vshll.u32 %v284_v40, 16  ;;  %v1726_v61 = vrot.slane %v1724_v23, 1  ;;  %v2231_v6 = vshll.u32 %v4009_v26, 16  ;;  %v2381_v49 = vrot.slane %v3960_v50, 1 }
  0xb1   : > { %2440 = vrot.lane.b32.xlu1 %v2406_v63, %s3315_s30  ;;  %v4011_v63 = vld [vmem:[#allocation2 + $0x34] sm:$0xf]  ;;  %v335_v31 = vrot.slane %v333_v57, 7  ;;  %v1889_v4 = vrot.slane %v2972_v36, 1  ;;  %v1890_v5 = vrot.slane %v3976_v21, 1  ;;  %v2229_v20 = vshrl.u32 %v4009_v26, 16 }
  0xb2   : > { %v4017_v30 = vpop.permute.xlu0 %1918  ;;  %v4029_v56 = vcombine.low %v819_v12, %v4011_v63  ;;  %v4045_v15 = vld [vmem:[#allocation2 + $0x9c] sm:$0xe]  ;;  %v2155_v12 = vsel %vm1070_vm6, %v2150_v27, %v2154_v11  ;;  %v1727_v28 = vsel %vm1070_vm6, %v1722_v37, %v1726_v61  ;;  %v800_v53 = vld [vmem:[#allocation2 + $0x24] sm:$0xe]  ;;  %v1115_v36 = vshll.u32 %v4035_v42, 16 }
  0xb3   : > { %v3993_v59 = vpop.permute.xlu1 %1406  ;;  %v338_v58 = vor.u32 %v336_v54, %v335_v31  ;;  %v4068_v61 = vld [vmem:[#allocation2 + $0x38] ss:$0 sps:$4 sm:$0x11]   ;;  %vm2547_vm14 = vcmask 130048   ;;  %vm2580_vm15 = vcmask 162816   ;;  %vm2613_vm1 = vcmask 195584  }
  0xb4   : > { %1784 = vrot.lane.b32.xlu0 %v1643_v17, %s3321_s9  ;;  %v4020_v17 = vcombine.low %v755_v8, %v3995_v44  ;;  %v2380_v8 = vrot.slane %v3013_v22, 1  ;;  %v1623_v23 = vshll.u32 %v4029_v56, 16  ;;  %v339_v22 = vrot.slane %v335_v31, 4  ;;  %v769_v54 = vld [vmem:[#allocation2 + $0x78] sm:$0xf] }
  0xb5   : > { %1285 = vrot.lane.b32.xlu1 %v1214_v14, %s3320_s8  ;;  %v341_v14 = vshrl.u32 %v284_v40, 16  ;;  %vm2646_vm2 = vcmask 228352   ;;  %vm2679_vm4 = vcmask 261120   ;;  %vm2719_vm8 = vcmask 293888  }
  0xb6   : > { %v1110_v10 = vshll.u32 %v4020_v17, 16  ;;  %v1108_v39 = vshrl.u32 %v4020_v17, 16  ;;  %v644_v57 = vld [vmem:[#allocation2 + $0x18] sm:$0xf]  ;;  %v2382_v11 = vsel %vm1343_vm7, %v2380_v8, %v2381_v49  ;;  %v1891_v8 = vsel %vm1343_vm7, %v1889_v4, %v1890_v5 }
  0xb7   : > { %v343_v62 = vrot.slane %v341_v14, 7  ;;  %v645_v27 = vsel %vm3436_vm9, %v338_v58, %v644_v57  ;;  %v648_v14 = vld [vmem:[#allocation2 + $0x20] sm:$0x1]  ;;  %v2916_v49 = vcombine.low %v800_v53, %v3995_v44  ;;  %v1117_v58 = vrot.slane %v1115_v36, 1 }
  0xb8   : > { %1912 = vrot.lane.b32.xlu0 %v1870_v2, %s3318_s6  ;;  %v4041_v2 = vld [vmem:[#allocation2 + $0xa4] ss:$0 sps:$4 sm:$0x11]   ;;  %v1112_v40 = vrot.slane %v1110_v10, 1  ;;  %646 = vst [vmem:[#allocation2 + $0x18] sm:$0xf] %v645_v27  ;;  %v3020_v10 = vcombine.low %v4045_v15, %v3989_v52 }
  0xb9   : > { %1414 = vrot.lane.b32.xlu1 %v1379_v51, %s3319_s7  ;;  %v346_v50 = vor.u32 %v344_v43, %v343_v62  ;;  %v2233_v51 = vrot.slane %v2231_v6, 1  ;;  %v348_v38 = vrot.slane %v343_v62, 4  ;;  %v2236_v37 = vshll.u32 %v4041_v2, 16  ;;  %v4099_v36 = vld [vmem:[#allocation2 + $0x80] ss:$0 sps:$4 sm:$0x11]  }
  0xba   : > { %v4033_v9 = vpop.permute.xlu1 %1422  ;;  %v1113_v62 = vor.u32 %v1112_v40, %v1108_v39  ;;  %v1625_v4 = vrot.slane %v1623_v23, 1  ;;  %v1628_v53 = vshll.u32 %v4068_v61, 16  ;;  %v1354_v15 = vrot.slane %v4035_v42, 1  ;;  %v884_v23 = vld [vmem:[#allocation2 + $0x3c] sm:$0xf] }
  0xbb   : > { %v649_v6 = vsel %vm3396_vm3, %v348_v38, %v648_v14  ;;  %v2238_v44 = vrot.slane %v2236_v37, 1  ;;  %v833_v37 = vld [vmem:[#allocation2 + $0x84] sm:$0xf] }
  0xbc   : > { %v4043_v16 = vpop.permute.xlu0 %2430  ;;  %2024 = vrot.lane.b32.xlu0 %v3943_v55, %s3314_s29  ;;  %v347_v55 = vsel %vm3445_vm10, %v339_v22, %v346_v50  ;;  %650 = vst [vmem:[#allocation2 + $0x20] sm:$0x1] %v649_v6  ;;  %v1118_v38 = vsel %vm1070_vm6, %v1113_v62, %v1117_v58  ;;  %v4120_v6 = vld [vmem:[#allocation2 + $0x88] sm:$0xf]  ;;  %v807_v62 = vld [vmem:[#allocation2 + $0x78] sm:$0xe] }
  0xbd   : > { %1526 = vrot.lane.b32.xlu1 %v3964_v47, %s3317_s5  ;;  %v4062_v47 = vld [vmem:[#allocation2 + $0x7c] sm:$0xf]  ;;  %647 = vst.msk [vmem:[#allocation2 + $0x1c] sm:$0xf] %vm170_vm0, %v347_v55  ;;  %v2401_v55 = vrot.slane %v3020_v10, 1 }
  0xbe   : > { %v4054_v21 = vpop.permute.xlu1 %1934  ;;  %v4081_v50 = vcombine.low %v769_v54, %v4062_v47 }
  0xc0   : > { %v1278_v43 = vpop.permute.xlu0 %1277  ;;  %2296 = vrot.lane.b32.xlu0 %v2155_v12, %s3316_s4  ;;  %v2234_v12 = vor.u32 %v2233_v51, %v2229_v20  ;;  %v4092_v51 = vld [vmem:[#allocation2 + $0x40] sm:$0xf] }
  0xc1   : > { %1798 = vrot.lane.b32.xlu1 %v1727_v28, %s3321_s9  ;;  %v2464_v22 = vsel %vm2448_vm11, %v3526_v32, %v1278_v43  ;;  %v1621_v28 = vshrl.u32 %v4029_v56, 16  ;;  %v1353_v32 = vrot.slane %v2916_v49, 1  ;;  %v4110_v14 = vcombine.low %v884_v23, %v4092_v51 }
  0xc2   : > { %v1807_v31 = vpop.permute.xlu1 %1806  ;;  %v2497_v52 = vsel %vm2481_vm12, %v2464_v22, %v3993_v59  ;;  %v1194_v59 = vshll.u32 %v4081_v50, 16 }
  0xc3   : > { %v2530_v54 = vsel %vm2514_vm13, %v2497_v52, %v3954_v60  ;;  %v1192_v60 = vshrl.u32 %v4081_v50, 16  ;;  %v4144_v52 = vld [vmem:[#allocation2 + $0x44] ss:$0 sps:$4 sm:$0x11]  }
  0xc4   : > { %v1294_v5 = vpop.permute.xlu0 %1293  ;;  %2424 = vrot.lane.b32.xlu0 %v2382_v11, %s3315_s30  ;;  %v864_v11 = vld [vmem:[#allocation2 + $0x30] sm:$0xe]  ;;  %v1196_v10 = vrot.slane %v1194_v59, 1  ;;  %v4156_v59 = vld [vmem:[#allocation2 + $0x8c] ss:$0 sps:$4 sm:$0x11]  }
  0xc5   : > { %1926 = vrot.lane.b32.xlu1 %v1891_v8, %s3318_s6  ;;  %v2480_v20 = vsel %vm2448_vm11, %v3546_v7, %v1294_v5  ;;  %v2402_v7 = vrot.slane %v4041_v2, 1  ;;  %v2964_v58 = vcombine.low %v864_v11, %v4011_v63  ;;  %v1630_v63 = vrot.slane %v1628_v53, 1 }
  0xc6   : > { %v2513_v40 = vsel %vm2481_vm12, %v2480_v20, %v4033_v9  ;;  %v2239_v9 = vsel %vm1070_vm6, %v2234_v12, %v2238_v44  ;;  %v1626_v12 = vor.u32 %v1625_v4, %v1621_v28  ;;  %v1866_v20 = vrot.slane %v4068_v61, 1 }
  0xc7   : > { %v4095_v39 = vpop.permute.xlu1 %1291  ;;  %v2546_v42 = vsel %vm2514_vm13, %v2513_v40, %v3970_v35  ;;  %v1355_v35 = vsel %vm1343_vm7, %v1353_v32, %v1354_v15  ;;  %v1197_v32 = vor.u32 %v1196_v10, %v1192_v60  ;;  %v1865_v53 = vrot.slane %v2964_v58, 1 }
  0xc8   : > { %v2579_v57 = vsel %vm2547_vm14, %v2546_v42, %v1807_v31  ;;  %v1791_v27 = vpop.permute.xlu0 %1790  ;;  %1269 = vrot.lane.b32.xlu0 %v1118_v38, %s3320_s8  ;;  %v929_v38 = vld [vmem:[#allocation2 + $0x3c] sm:$0xe]  ;;  %v1375_v42 = vrot.slane %v4099_v36, 1 }
  0xc9   : > { %2038 = vrot.lane.b32.xlu1 %v4009_v26, %s3314_s29  ;;  %v2563_v2 = vsel %vm2547_vm14, %v2530_v54, %v1791_v27  ;;  %v2612_v43 = vsel %vm2580_vm15, %v2579_v57, %v4054_v21  ;;  %v1199_v26 = vshll.u32 %v4099_v36, 16  ;;  %v1631_v57 = vsel %vm1070_vm6, %v1626_v12, %v1630_v63  ;;  %v183_v27 = vld [vmem:[#allocation2 + $0xc] sm:$0x1] }
  0xca   : > { %v2596_v8 = vsel %vm2580_vm15, %v2563_v2, %v4017_v30  ;;  %v2645_v49 = vsel %vm2613_vm1, %v2612_v43, %v3881_v33  ;;  %v4137_v33 = vcombine.low %v833_v37, %v4120_v6  ;;  %v4166_v2 = vld [vmem:[#allocation2 + $0x1c] sm:$0xf]  ;;  %v281_v43 = vld [vmem:[%s3422_s28] sm:$0xf]  ;;  %v2478_v36 = vsel %vm2448_vm11, %v3570_v46, %v4095_v39 }
  0xcb   : > { %v4122_v31 = vpop.permute.xlu1 %1420  ;;  %v2629_v21 = vsel %vm2613_vm1, %v2596_v8, %v3980_v45  ;;  %v2678_v22 = vsel %vm2646_vm2, %v2645_v49, %v3938_v29  ;;  %v2135_v45 = vshll.u32 %v4110_v14, 16  ;;  %v2923_v29 = vcombine.low %v807_v62, %v4062_v47  ;;  %v282_v49 = vld [vmem:[%s3422_s28 + $0x4] sm:$0xf] }
  0xcc   : > { %v2303_v5 = vpop.permute.xlu0 %2302  ;;  %v2711_v30 = vsel %vm2679_vm4, %v2678_v22, %v3908_v25  ;;  %1398 = vrot.lane.b32.xlu0 %v1355_v35, %s3319_s7  ;;  %v2403_v25 = vsel %vm1343_vm7, %v2401_v55, %v2402_v7  ;;  %v1201_v15 = vrot.slane %v1199_v26, 1  ;;  %v2133_v47 = vshrl.u32 %v4110_v14, 16  ;;  %v871_v7 = vld [vmem:[#allocation2 + $0x84] sm:$0xe]  ;;  %v4187_v22 = vld [vmem:[#allocation2 + $0x94] sm:$0xf] }
  0xcd   : > { %2310 = vrot.lane.b32.xlu1 %v2239_v9, %s3316_s4  ;;  %v2662_v44 = vsel %vm2646_vm2, %v2629_v21, %v2303_v5  ;;  %3051 = vmatprep.subr.msk.bf16.mxu0 %vm2719_vm8, %v2711_v30  ;;  %v1707_v40 = vshll.u32 %v4137_v33, 16  ;;  %v2137_v61 = vrot.slane %v2135_v45, 1  ;;  %v2140_v55 = vshll.u32 %v4144_v52, 16  ;;  %v233_v9 = vld [vmem:[#allocation2 + $0x14] sm:$0x1] }
  0xce   : > { %v2695_v4 = vsel %vm2679_vm4, %v2662_v44, %v4043_v16  ;;  %v1374_v16 = vrot.slane %v2923_v29, 1  ;;  %v1202_v54 = vsel %vm1070_vm6, %v1197_v32, %v1201_v15  ;;  %v3012_v35 = vcombine.low %v929_v38, %v4092_v51  ;;  %v898_v21 = vld [vmem:[#allocation2 + $0x90] sm:$0xf]  ;;  %v4194_v15 = vld [vmem:[#allocation2 + $0x20] ss:$0 sps:$4 sm:$0x11]  }
  0xcf   : > { %v4146_v28 = vpop.permute.xlu1 %1532  ;;  %v2737_v23 = vsel %vm2719_vm8, %v2695_v4, 0  ;;  %v1705_v60 = vshrl.u32 %v4137_v33, 16  ;;  %v1709_v37 = vrot.slane %v1707_v40, 1  ;;  %v1712_v8 = vshll.u32 %v4156_v59, 16 }
  0xd0   : > { %3034 = vmatpush3.bf16.xpose.msra.mxu0 %v2737_v23  ;;  %1510 = vrot.lane.b32.xlu0 %v4029_v56, %s3317_s5  ;;  %v753_v56 = vld [vmem:[#allocation2 + $0x18] sm:$0xf]  ;;  %v1867_v10 = vsel %vm1343_vm7, %v1865_v53, %v1866_v20  ;;  %v2971_v51 = vcombine.low %v871_v7, %v4120_v6  ;;  %v184_v26 = vsel %vm3396_vm3, 0, %v183_v27  ;;  %v234_v46 = vsel %vm3402_vm5, 0, %v233_v9  ;;  %v767_v9 = vld [vmem:[#allocation2 + $0x6c] sm:$0xf] }
  0xd1   : > { %2438 = vrot.lane.b32.xlu1 %v2403_v25, %s3315_s30  ;;  %v1376_v62 = vsel %vm1343_vm7, %v1374_v16, %v1375_v42  ;;  %v4185_v58 = vcombine.low %v753_v56, %v4166_v2  ;;  %185 = vst [vmem:[#allocation2 + $0xc] sm:$0x1] %v184_v26  ;;  %235 = vst [vmem:[#allocation2 + $0x14] sm:$0x1] %v234_v46  ;;  %v316_v12 = vshrl.u32 %v281_v43, 16  ;;  %v319_v5 = vshll.u32 %v281_v43, 16 }
  0xd2   : > { %v2511_v6 = vsel %vm2481_vm12, %v2478_v36, %v4122_v31  ;;  %v2138_v30 = vor.u32 %v2137_v61, %v2133_v47  ;;  %v324_v63 = vshrl.u32 %v282_v49, 16  ;;  %v327_v3 = vshll.u32 %v282_v49, 16  ;;  %v817_v61 = vld [vmem:[#allocation2 + $0x24] sm:$0xf] }
  0xd3   : > { %v1805_v11 = vpop.permute.xlu1 %1804  ;;  %v2142_v44 = vrot.slane %v2140_v55, 1  ;;  %v1710_v45 = vor.u32 %v1709_v37, %v1705_v60  ;;  %v1714_v29 = vrot.slane %v1712_v8, 1  ;;  %v318_v25 = vrot.slane %v316_v12, 7  ;;  %v4204_v55 = vld [vmem:[#allocation2 + $0x28] sm:$0xf] }
  0xd4   : > { %1782 = vrot.lane.b32.xlu0 %v1631_v57, %s3321_s9  ;;  %v2377_v4 = vrot.slane %v3012_v35, 1  ;;  %v2378_v32 = vrot.slane %v4144_v52, 1  ;;  %v4197_v53 = vcombine.low %v898_v21, %v4187_v22  ;;  %v326_v31 = vrot.slane %v324_v63, 7 }
  0xd5   : > { %1283 = vrot.lane.b32.xlu1 %v1202_v54, %s3320_s8  ;;  %v2544_v20 = vsel %vm2514_vm13, %v2511_v6, %v4146_v28  ;;  %v1098_v38 = vshll.u32 %v4185_v58, 16  ;;  %v321_v47 = vor.u32 %v319_v5, %v318_v25  ;;  %v322_v40 = vrot.slane %v318_v25, 4  ;;  %v4209_v28 = vld [vmem:[#allocation2 + $0x98] ss:$0 sps:$4 sm:$0x11]  }
  0xd6   : > { %v1886_v42 = vrot.slane %v2971_v51, 1  ;;  %v329_v52 = vor.u32 %v327_v3, %v326_v31  ;;  %v331_v7 = vrot.slane %v326_v31, 4  ;;  %v2143_v57 = vsel %vm1070_vm6, %v2138_v30, %v2142_v44  ;;  %v799_v51 = vld [vmem:[#allocation2 + $0x18] sm:$0xe]  ;;  %v936_v44 = vld [vmem:[#allocation2 + $0x90] sm:$0xe] }
  0xd7   : > { %v1933_v39 = vpop.permute.xlu1 %1932  ;;  %v1715_v54 = vsel %vm1070_vm6, %v1710_v45, %v1714_v29  ;;  %v1887_v27 = vrot.slane %v4156_v59, 1  ;;  %v2577_v35 = vsel %vm2547_vm14, %v2544_v20, %v1805_v11  ;;  %v1096_v56 = vshrl.u32 %v4185_v58, 16  ;;  %v4221_v11 = vld [vmem:[#allocation2 + $0x70] sm:$0xf] }
  0xd8   : > { %1910 = vrot.lane.b32.xlu0 %v1867_v10, %s3318_s6  ;;  %v2219_v43 = vshll.u32 %v4197_v53, 16  ;;  %v330_v36 = vsel %vm3445_vm10, %v322_v40, %v329_v52  ;;  %v637_v60 = vld [vmem:[#allocation2 + $0xc] sm:$0xf]  ;;  %v641_v59 = vld [vmem:[#allocation2 + $0x14] sm:$0x1]  ;;  %v1100_v8 = vrot.slane %v1098_v38, 1  ;;  %v2379_v48 = vsel %vm1343_vm7, %v2377_v4, %v2378_v32 }
  0xd9   : > { %1412 = vrot.lane.b32.xlu1 %v1376_v62, %s3319_s7  ;;  %v1103_v49 = vshll.u32 %v4194_v15, 16  ;;  %640 = vst.msk [vmem:[#allocation2 + $0x10] sm:$0xf] %vm170_vm0, %v330_v36  ;;  %v2610_v26 = vsel %vm2580_vm15, %v2577_v35, %v1933_v39  ;;  %v1888_v46 = vsel %vm1343_vm7, %v1886_v42, %v1887_v27  ;;  %v4234_v62 = vcombine.low %v817_v61, %v4204_v55  ;;  %v4251_v4 = vld [vmem:[#allocation2 + $0x2c] ss:$0 sps:$4 sm:$0x11]  }
  0xda   : > { %v4202_v16 = vpop.permute.xlu0 %1275  ;;  %v2217_v41 = vshrl.u32 %v4197_v53, 16  ;;  %v2221_v21 = vrot.slane %v2219_v43, 1  ;;  %v2224_v12 = vshll.u32 %v4209_v28, 16  ;;  %v4242_v5 = vcombine.low %v767_v9, %v4221_v11  ;;  %v863_v52 = vld [vmem:[#allocation2 + $0x24] sm:$0xe] }
  0xdb   : > { %v2045_v23 = vpop.permute.xlu1 %2044  ;;  %v1101_v6 = vor.u32 %v1100_v8, %v1096_v56  ;;  %v1105_v30 = vrot.slane %v1103_v49, 1  ;;  %v2915_v3 = vcombine.low %v799_v51, %v4166_v2  ;;  %v1611_v25 = vshll.u32 %v4234_v62, 16  ;;  %v4256_v2 = vld [vmem:[#allocation2 + $0x74] ss:$0 sps:$4 sm:$0x11]  }
  0xdc   : > { %2022 = vrot.lane.b32.xlu0 %v4110_v14, %s3314_s29  ;;  %v638_v14 = vsel %vm3436_vm9, %v321_v47, %v637_v60  ;;  %v2643_v1 = vsel %vm2613_vm1, %v2610_v26, %v2045_v23  ;;  %v3019_v32 = vcombine.low %v936_v44, %v4187_v22  ;;  %v2222_v31 = vor.u32 %v2221_v21, %v2217_v41  ;;  %v882_v22 = vld [vmem:[#allocation2 + $0x30] sm:$0xf]  ;;  %v4268_v35 = vld [vmem:[#allocation2 + $0x34] sm:$0xf]  ;;  %v831_v56 = vld [vmem:[#allocation2 + $0x78] sm:$0xf] }
  0xdd   : > { %1524 = vrot.lane.b32.xlu1 %v4137_v33, %s3317_s5  ;;  %v642_v33 = vsel %vm3396_vm3, %v331_v7, %v641_v59  ;;  %639 = vst [vmem:[#allocation2 + $0xc] sm:$0xf] %v638_v14  ;;  %v2226_v20 = vrot.slane %v2224_v12, 1  ;;  %v1106_v23 = vsel %vm1070_vm6, %v1101_v6, %v1105_v30  ;;  %v1350_v38 = vrot.slane %v2915_v3, 1 }
  0xde   : > { %v4228_v10 = vpop.permute.xlu0 %1404  ;;  %643 = vst [vmem:[#allocation2 + $0x14] sm:$0x1] %v642_v33  ;;  %v1351_v47 = vrot.slane %v4194_v15, 1  ;;  %v1182_v40 = vshll.u32 %v4242_v5, 16  ;;  %v1609_v7 = vshrl.u32 %v4234_v62, 16  ;;  %v2398_v9 = vrot.slane %v3019_v32, 1 }
  0xdf   : > { %v2317_v37 = vpop.permute.xlu1 %2316  ;;  %v2227_v27 = vsel %vm1070_vm6, %v2222_v31, %v2226_v20  ;;  %v2399_v15 = vrot.slane %v4209_v28, 1  ;;  %v1180_v36 = vshrl.u32 %v4242_v5, 16  ;;  %v1187_v59 = vshll.u32 %v4256_v2, 16  ;;  %v4286_v12 = vld [vmem:[#allocation2 + $0x38] ss:$0 sps:$4 sm:$0x11]  }
  0xe0   : > { %2294 = vrot.lane.b32.xlu0 %v2143_v57, %s3316_s4  ;;  %v2676_v39 = vsel %vm2646_vm2, %v2643_v1, %v2317_v37  ;;  %v1613_v57 = vrot.slane %v1611_v25, 1  ;;  %v1352_v43 = vsel %vm1343_vm7, %v1350_v38, %v1351_v47  ;;  %v1184_v60 = vrot.slane %v1182_v40, 1  ;;  %v4273_v37 = vld [vmem:[#allocation2 + $0x7c] sm:$0xf]  ;;  %v4307_v38 = vld [vmem:[#allocation2 + $0x10] sm:$0xf] }
  0xe1   : > { %1796 = vrot.lane.b32.xlu1 %v1715_v54, %s3321_s9  ;;  %v1616_v54 = vshll.u32 %v4251_v4, 16  ;;  %v2963_v14 = vcombine.low %v863_v52, %v4204_v55  ;;  %v4277_v33 = vcombine.low %v882_v22, %v4268_v35  ;;  %v4282_v51 = vcombine.low %v831_v56, %v4273_v37  ;;  %v4289_v30 = vld [vmem:[#allocation2 + $0x80] ss:$0 sps:$4 sm:$0x11]   ;;  %v928_v47 = vld [vmem:[#allocation2 + $0x30] sm:$0xe] }
  0xe2   : > { %v4246_v45 = vpop.permute.xlu0 %1516  ;;  %v1614_v28 = vor.u32 %v1613_v57, %v1609_v7  ;;  %v2400_v26 = vsel %vm1343_vm7, %v2398_v9, %v2399_v15  ;;  %v1189_v41 = vrot.slane %v1187_v59, 1  ;;  %v1372_v31 = vrot.slane %v4256_v2, 1  ;;  %v870_v9 = vld [vmem:[#allocation2 + $0x78] sm:$0xe]  ;;  %v896_v15 = vld [vmem:[#allocation2 + $0x84] sm:$0xf] }
  0xe3   : > { %v2445_v63 = vpop.permute.xlu1 %2444  ;;  %v2123_v6 = vshll.u32 %v4277_v33, 16  ;;  %v1695_v44 = vshll.u32 %v4282_v51, 16  ;;  %v2128_v20 = vshll.u32 %v4286_v12, 16  ;;  %v1700_v52 = vshll.u32 %v4289_v30, 16  ;;  %v4324_v56 = vld [vmem:[#allocation2 + $0x88] sm:$0xf] }
  0xe4   : > { %v2709_v29 = vsel %vm2679_vm4, %v2676_v39, %v2445_v63  ;;  %2422 = vrot.lane.b32.xlu0 %v2379_v48, %s3315_s30  ;;  %v1618_v48 = vrot.slane %v1616_v54, 1  ;;  %v1862_v39 = vrot.slane %v2963_v14, 1  ;;  %v2462_v63 = vsel %vm2448_vm11, %v3634_v13, %v4202_v16 }
  0xe5   : > { %3052 = vmatprep.subr.msk.bf16.mxu0 %vm2719_vm8, %v2709_v29  ;;  %1924 = vrot.lane.b32.xlu1 %v1888_v46, %s3318_s6  ;;  %v1185_v46 = vor.u32 %v1184_v60, %v1180_v36  ;;  %v2495_v29 = vsel %vm2481_vm12, %v2462_v63, %v4228_v10  ;;  %v2121_v10 = vshrl.u32 %v4277_v33, 16  ;;  %v2125_v40 = vrot.slane %v2123_v6, 1  ;;  %v4343_v6 = vld [vmem:[#allocation2 + $0x1c] sm:$0xf] }
  0xe6   : > { %v1789_v42 = vpop.permute.xlu0 %1788  ;;  %v1619_v3 = vsel %vm1070_vm6, %v1614_v28, %v1618_v48  ;;  %v2528_v13 = vsel %vm2514_vm13, %v2495_v29, %v4246_v45  ;;  %v1693_v7 = vshrl.u32 %v4282_v51, 16  ;;  %v1697_v57 = vrot.slane %v1695_v44, 1 }
  0xe7   : > { %v1290_v61 = vpop.permute.xlu1 %1289  ;;  %v1190_v25 = vsel %vm1070_vm6, %v1185_v46, %v1189_v41  ;;  %v2130_v60 = vrot.slane %v2128_v20, 1  ;;  %v1702_v14 = vrot.slane %v1700_v52, 1  ;;  %v4335_v46 = vcombine.low %v896_v15, %v4324_v56  ;;  %v4359_v20 = vld [vmem:[#allocation2 + $0x64] sm:$0xf] }
  0xe8   : > { %1267 = vrot.lane.b32.xlu0 %v1106_v23, %s3320_s8  ;;  %v751_v23 = vld [vmem:[#allocation2 + $0xc] sm:$0xf]  ;;  %v2476_v45 = vsel %vm2448_vm11, %v3682_v19, %v1290_v61  ;;  %v1698_v48 = vor.u32 %v1697_v57, %v1693_v7  ;;  %v1884_v29 = vrot.slane %v4289_v30, 1 }
  0xe9   : > { %2036 = vrot.lane.b32.xlu1 %v4197_v53, %s3314_s29  ;;  %v806_v53 = vld [vmem:[#allocation2 + $0x6c] sm:$0xe] }
  0xea   : > { %v1917_v8 = vpop.permute.xlu0 %1916  ;;  %v2922_v1 = vcombine.low %v806_v53, %v4221_v11  ;;  %v1863_v11 = vrot.slane %v4251_v4, 1  ;;  %v2561_v4 = vsel %vm2547_vm14, %v2528_v13, %v1789_v42  ;;  %v2126_v53 = vor.u32 %v2125_v40, %v2121_v10 }
  0xeb   : > { %v1419_v49 = vpop.permute.xlu1 %1418  ;;  %v2594_v2 = vsel %vm2580_vm15, %v2561_v4, %v1917_v8 }
  0xec   : > { %1396 = vrot.lane.b32.xlu0 %v1352_v43, %s3319_s7  ;;  %v1371_v32 = vrot.slane %v2922_v1, 1  ;;  %v1864_v54 = vsel %vm1343_vm7, %v1862_v39, %v1863_v11  ;;  %v3011_v43 = vcombine.low %v928_v47, %v4268_v35  ;;  %v2509_v59 = vsel %vm2481_vm12, %v2476_v45, %v1419_v49  ;;  %v4337_v35 = vld [vmem:[#allocation2 + $0x14] ss:$0 sps:$4 sm:$0x11]   ;;  %v815_v39 = vld [vmem:[#allocation2 + $0x18] sm:$0xf] }
  0xed   : > { %2308 = vrot.lane.b32.xlu1 %v2227_v27, %s3316_s4  ;;  %v4322_v27 = vcombine.low %v751_v23, %v4307_v38  ;;  %v2131_v63 = vsel %vm1070_vm6, %v2126_v53, %v2130_v60  ;;  %v4347_v11 = vld [vmem:[#allocation2 + $0x8c] ss:$0 sps:$4 sm:$0x11]   ;;  %v798_v23 = vld [vmem:[#allocation2 + $0xc] sm:$0xe]  ;;  %v4365_v30 = vcombine.low %v815_v39, %v4343_v6  ;;  %v2205_v47 = vshrl.u32 %v4335_v46, 16 }
  0xee   : > { %v2029_v21 = vpop.permute.xlu0 %2028  ;;  %v1373_v22 = vsel %vm1343_vm7, %v1371_v32, %v1372_v31  ;;  %v765_v32 = vld [vmem:[#allocation2 + $0x60] sm:$0xf] }
  0xef   : > { %v1531_v55 = vpop.permute.xlu1 %1530  ;;  %v2627_v42 = vsel %vm2613_vm1, %v2594_v2, %v2029_v21  ;;  %v1086_v49 = vshll.u32 %v4322_v27, 16  ;;  %v4374_v2 = vcombine.low %v765_v32, %v4359_v20  ;;  %v1599_v60 = vshll.u32 %v4365_v30, 16  ;;  %v4404_v32 = vld [vmem:[#allocation2 + $0x28] sm:$0xf] }
  0xf0   : > { %1508 = vrot.lane.b32.xlu0 %v4234_v62, %s3317_s5  ;;  %v2542_v41 = vsel %vm2514_vm13, %v2509_v59, %v1531_v55  ;;  %v1703_v55 = vsel %vm1070_vm6, %v1698_v48, %v1702_v14  ;;  %v4388_v59 = vld [vmem:[#allocation2 + $0x68] ss:$0 sps:$4 sm:$0x11]   ;;  %v1348_v14 = vrot.slane %v4337_v35, 1 }
  0xf1   : > { %2436 = vrot.lane.b32.xlu1 %v2400_v26, %s3315_s30  ;;  %v2970_v26 = vcombine.low %v870_v9, %v4273_v37  ;;  %v2375_v37 = vrot.slane %v4286_v12, 1  ;;  %v1084_v12 = vshrl.u32 %v4322_v27, 16  ;;  %v1088_v13 = vrot.slane %v1086_v49, 1 }
  0xf2   : > { %v2301_v16 = vpop.permute.xlu0 %2300  ;;  %v1597_v49 = vshrl.u32 %v4365_v30, 16 }
  0xf3   : > { %v1803_v62 = vpop.permute.xlu1 %1802  ;;  %v2660_v19 = vsel %vm2646_vm2, %v2627_v42, %v2301_v16  ;;  %v1883_v44 = vrot.slane %v2970_v26, 1  ;;  %v1091_v16 = vshll.u32 %v4337_v35, 16  ;;  %v1089_v7 = vor.u32 %v1088_v13, %v1084_v12  ;;  %v829_v13 = vld [vmem:[#allocation2 + $0x6c] sm:$0xf] }
  0xf4   : > { %1780 = vrot.lane.b32.xlu0 %v1619_v3, %s3321_s9  ;;  %v2374_v3 = vrot.slane %v3011_v43, 1  ;;  %v2575_v31 = vsel %vm2547_vm14, %v2542_v41, %v1803_v62  ;;  %v2212_v62 = vshll.u32 %v4347_v11, 16  ;;  %v2914_v42 = vcombine.low %v798_v23, %v4307_v38 }
  0xf5   : > { %1281 = vrot.lane.b32.xlu1 %v1190_v25, %s3320_s8  ;;  %v2207_v25 = vshll.u32 %v4335_v46, 16  ;;  %v1885_v40 = vsel %vm1343_vm7, %v1883_v44, %v1884_v29  ;;  %v1093_v57 = vrot.slane %v1091_v16, 1  ;;  %v1175_v35 = vshll.u32 %v4388_v59, 16  ;;  %v4407_v16 = vld [vmem:[#allocation2 + $0x70] sm:$0xf] }
  0xf6   : > { %v2429_v61 = vpop.permute.xlu0 %2428  ;;  %v2376_v4 = vsel %vm1343_vm7, %v2374_v3, %v2375_v37  ;;  %v1347_v53 = vrot.slane %v2914_v42, 1  ;;  %v805_v3 = vld [vmem:[#allocation2 + $0x60] sm:$0xe]  ;;  %v1168_v44 = vshrl.u32 %v4374_v2, 16 }
  0xf7   : > { %v1931_v36 = vpop.permute.xlu1 %1930  ;;  %v2693_v8 = vsel %vm2679_vm4, %v2660_v19, %v2429_v61  ;;  %v2209_v52 = vrot.slane %v2207_v25, 1  ;;  %v4382_v61 = vld [vmem:[#allocation2 + $0x20] ss:$0 sps:$4 sm:$0x11]   ;;  %v880_v25 = vld [vmem:[#allocation2 + $0x24] sm:$0xf] }
  0xf8   : > { %1908 = vrot.lane.b32.xlu0 %v1864_v54, %s3318_s6  ;;  %v2735_v28 = vsel %vm2719_vm8, %v2693_v8, 0  ;;  %v2608_v10 = vsel %vm2580_vm15, %v2575_v31, %v1931_v36  ;;  %v935_v54 = vld [vmem:[#allocation2 + $0x84] sm:$0xe]  ;;  %v2214_v36 = vrot.slane %v2212_v62, 1  ;;  %v1094_v8 = vsel %vm1070_vm6, %v1089_v7, %v1093_v57 }
  0xf9   : > { %1410 = vrot.lane.b32.xlu1 %v1373_v22, %s3319_s7  ;;  %3036 = vmatpush3.bf16.xpose.msra.mxu0 %v2735_v28  ;;  %v2210_v43 = vor.u32 %v2209_v52, %v2205_v47  ;;  %v3018_v38 = vcombine.low %v935_v54, %v4324_v56  ;;  %v1170_v28 = vshll.u32 %v4374_v2, 16  ;;  %v1604_v41 = vshll.u32 %v4382_v61, 16  ;;  %v4421_v42 = vld [vmem:[#allocation2 + $0x2c] ss:$0 sps:$4 sm:$0x11]  }
  0xfa   : > { %v4341_v1 = vpop.permute.xlu0 %1273  ;;  %v1601_v56 = vrot.slane %v1599_v60, 1  ;;  %v1349_v37 = vsel %vm1343_vm7, %v1347_v53, %v1348_v14  ;;  %v1369_v57 = vrot.slane %v4388_v59, 1  ;;  %v4436_v60 = vld [vmem:[#allocation2 + $0x74] ss:$0 sps:$4 sm:$0x11]  }
  0xfb   : > { %v2043_v21 = vpop.permute.xlu1 %2042  ;;  %v2395_v39 = vrot.slane %v3018_v38, 1  ;;  %v1172_v29 = vrot.slane %v1170_v28, 1  ;;  %v1606_v23 = vrot.slane %v1604_v41, 1  ;;  %v2460_v54 = vsel %vm2448_vm11, %v3729_v24, %v4341_v1 }
  0xfc   : > { %2020 = vrot.lane.b32.xlu0 %v4277_v33, %s3314_s29  ;;  %v2641_v45 = vsel %vm2613_vm1, %v2608_v10, %v2043_v21  ;;  %v862_v21 = vld [vmem:[#allocation2 + $0x18] sm:$0xe]  ;;  %v1177_v10 = vrot.slane %v1175_v35, 1  ;;  %v2116_v41 = vshll.u32 %v4421_v42, 16  ;;  %v1688_v35 = vshll.u32 %v4436_v60, 16 }
  0xfd   : > { %1522 = vrot.lane.b32.xlu1 %v4282_v51, %s3317_s5  ;;  %v1173_v62 = vor.u32 %v1172_v29, %v1168_v44 }
  0xfe   : > { %v4361_v33 = vpop.permute.xlu0 %1402 }
  0xff   : > { %v2315_v51 = vpop.permute.xlu1 %2314 }
 0x100   : > { %2292 = vrot.lane.b32.xlu0 %v2131_v63, %s3316_s4  ;;  %v2674_v9 = vsel %vm2646_vm2, %v2641_v45, %v2315_v51  ;;  %v2396_v63 = vrot.slane %v4347_v11, 1  ;;  %v2921_v11 = vcombine.low %v805_v3, %v4359_v20  ;;  %v1602_v51 = vor.u32 %v1601_v56, %v1597_v49 }
 0x101   : > { %1794 = vrot.lane.b32.xlu1 %v1703_v55, %s3321_s9  ;;  %v2215_v55 = vsel %vm1070_vm6, %v2210_v43, %v2214_v36  ;;  %v1860_v20 = vrot.slane %v4382_v61, 1  ;;  %v2493_v61 = vsel %vm2481_vm12, %v2460_v54, %v4361_v33  ;;  %v1178_v36 = vsel %vm1070_vm6, %v1173_v62, %v1177_v10 }
 0x102   : > { %v4378_v22 = vpop.permute.xlu0 %1514  ;;  %v2397_v47 = vsel %vm1343_vm7, %v2395_v39, %v2396_v63  ;;  %v1368_v7 = vrot.slane %v2921_v11, 1  ;;  %v1607_v43 = vsel %vm1070_vm6, %v1602_v51, %v1606_v23  ;;  %v4467_v11 = vld [vmem:[#allocation2 + $0x8] ss:$0 sps:$4 sm:$0x11]   ;;  %v2118_v23 = vrot.slane %v2116_v41, 1 }
 0x103   : > { %v2443_v15 = vpop.permute.xlu1 %2442  ;;  %v2526_v1 = vsel %vm2514_vm13, %v2493_v61, %v4378_v22 }
 0x104   : > { %v2707_v19 = vsel %vm2679_vm4, %v2674_v9, %v2443_v15  ;;  %2420 = vrot.lane.b32.xlu0 %v2376_v4, %s3315_s30  ;;  %v4413_v4 = vcombine.low %v880_v25, %v4404_v32  ;;  %v749_v15 = vld [vmem:[#allocation2] sm:$0xf]  ;;  %v1370_v53 = vsel %vm1343_vm7, %v1368_v7, %v1369_v57  ;;  %v1881_v7 = vrot.slane %v4436_v60, 1 }
 0x105   : > { %1922 = vrot.lane.b32.xlu1 %v1885_v40, %s3318_s6  ;;  %3053 = vmatprep.subr.msk.bf16.mxu0 %vm2719_vm8, %v2707_v19  ;;  %v4430_v19 = vld [vmem:[#allocation2 + $0x4] sm:$0xf]  ;;  %v797_v57 = vld [vmem:[#allocation2] sm:$0xe] }
 0x106   : > { %v1787_v48 = vpop.permute.xlu0 %1786  ;;  %v2111_v9 = vshll.u32 %v4413_v4, 16  ;;  %v2109_v33 = vshrl.u32 %v4413_v4, 16  ;;  %v4446_v14 = vcombine.low %v749_v15, %v4430_v19  ;;  %v813_v15 = vld [vmem:[#allocation2 + $0xc] sm:$0xf] }
 0x107   : > { %v1288_v26 = vpop.permute.xlu1 %1287  ;;  %v3244_v60 = vld [vmem:[#allocation2 + $0x80] ss:$0 sps:$4 sm:$0x11]  }
 0x108   : > { %1265 = vrot.lane.b32.xlu0 %v1094_v8, %s3320_s8  ;;  %v2559_v8 = vsel %vm2547_vm14, %v2526_v1, %v1787_v48  ;;  %v2474_v49 = vsel %vm2448_vm11, %v3788_v34, %v1288_v26  ;;  %v2113_v22 = vrot.slane %v2111_v9, 1  ;;  %v927_v48 = vld [vmem:[#allocation2 + $0x24] sm:$0xe]  ;;  %v894_v26 = vld [vmem:[#allocation2 + $0x78] sm:$0xf]  ;;  %v1074_v51 = vshll.u32 %v4446_v14, 16 }
 0x109   : > { %2034 = vrot.lane.b32.xlu1 %v4335_v46, %s3314_s29  ;;  %v2962_v46 = vcombine.low %v862_v21, %v4343_v6  ;;  %v4417_v6 = vcombine.low %v829_v13, %v4407_v16  ;;  %v869_v21 = vld [vmem:[#allocation2 + $0x6c] sm:$0xe]  ;;  %v3010_v25 = vcombine.low %v927_v48, %v4404_v32  ;;  %v1072_v54 = vshrl.u32 %v4446_v14, 16 }
 0x10a   : > { %v1915_v31 = vpop.permute.xlu0 %1914  ;;  %v2114_v13 = vor.u32 %v2113_v22, %v2109_v33  ;;  %v1076_v9 = vrot.slane %v1074_v51, 1  ;;  %v2200_v41 = vshll.u32 %v3244_v60, 16 }
 0x10b   : > { %v1417_v12 = vpop.permute.xlu1 %1416  ;;  %v1859_v45 = vrot.slane %v2962_v46, 1  ;;  %v1683_v24 = vshll.u32 %v4417_v6, 16  ;;  %v2592_v28 = vsel %vm2580_vm15, %v2559_v8, %v1915_v31  ;;  %v1681_v39 = vshrl.u32 %v4417_v6, 16 }
 0x10c   : > { %1394 = vrot.lane.b32.xlu0 %v1349_v37, %s3319_s7  ;;  %v2507_v44 = vsel %vm2481_vm12, %v2474_v49, %v1417_v12  ;;  %v2969_v31 = vcombine.low %v869_v21, %v4407_v16 }
 0x10d   : > { %2306 = vrot.lane.b32.xlu1 %v2215_v55, %s3316_s4  ;;  %v1861_v38 = vsel %vm1343_vm7, %v1859_v45, %v1860_v20  ;;  %v1685_v63 = vrot.slane %v1683_v24, 1  ;;  %v4458_v55 = vld [vmem:[#allocation2 + $0x7c] sm:$0xf]  ;;  %v2372_v45 = vrot.slane %v4421_v42, 1  ;;  %v2119_v42 = vsel %vm1070_vm6, %v2114_v13, %v2118_v23 }
 0x10e   : > { %v2027_v40 = vpop.permute.xlu0 %2026  ;;  %v2985_v62 = vcombine.low %v894_v26, %v4458_v55  ;;  %v1880_v20 = vrot.slane %v2969_v31, 1  ;;  %v2202_v26 = vrot.slane %v2200_v41, 1  ;;  %v926_v41 = vld [vmem:[#allocation2 + $0x18] sm:$0xe] }
 0x10f   : > { %v1529_v52 = vpop.permute.xlu1 %1528  ;;  %v2625_v56 = vsel %vm2613_vm1, %v2592_v28, %v2027_v40  ;;  %v1686_v12 = vor.u32 %v1685_v63, %v1681_v39  ;;  %v2371_v40 = vrot.slane %v3010_v25, 1 }
 0x110   : > { %1506 = vrot.lane.b32.xlu0 %v4365_v30, %s3317_s5  ;;  %v2540_v32 = vsel %vm2514_vm13, %v2507_v44, %v1529_v52  ;;  %v1079_v52 = vshll.u32 %v4467_v11, 16  ;;  %v2195_v24 = vshll.u32 %v2985_v62, 16  ;;  %v2193_v49 = vshrl.u32 %v2985_v62, 16 }
 0x111   : > { %2434 = vrot.lane.b32.xlu1 %v2397_v47, %s3315_s30  ;;  %v1690_v47 = vrot.slane %v1688_v35, 1 }
 0x112   : > { %v2299_v30 = vpop.permute.xlu0 %2298  ;;  %v2197_v22 = vrot.slane %v2195_v24, 1  ;;  %v3249_v24 = vld [vmem:[#allocation2 + $0x20] ss:$0 sps:$4 sm:$0x11]  }
 0x113   : > { %v1801_v59 = vpop.permute.xlu1 %1800  ;;  %v2658_v3 = vsel %vm2646_vm2, %v2625_v56, %v2299_v30  ;;  %v1882_v30 = vsel %vm1343_vm7, %v1880_v20, %v1881_v7 }
 0x114   : > { %1778 = vrot.lane.b32.xlu0 %v1607_v43, %s3321_s9  ;;  %v2573_v61 = vsel %vm2547_vm14, %v2540_v32, %v1801_v59  ;;  %v1691_v43 = vsel %vm1070_vm6, %v1686_v12, %v1690_v47  ;;  %v1077_v59 = vor.u32 %v1076_v9, %v1072_v54  ;;  %v2393_v47 = vrot.slane %v3244_v60, 1 }
 0x115   : > { %1279 = vrot.lane.b32.xlu1 %v1178_v36, %s3320_s8  ;;  %v4485_v36 = vld [vmem:[#allocation2 + $0x10] sm:$0xf] }
 0x116   : > { %v2427_v37 = vpop.permute.xlu0 %2426  ;;  %v2929_v33 = vcombine.low %v813_v15, %v4485_v36 }
 0x117   : > { %v1929_v34 = vpop.permute.xlu1 %1928  ;;  %v2691_v29 = vsel %vm2679_vm4, %v2658_v3, %v2427_v37  ;;  %v1345_v3 = vrot.slane %v4467_v11, 1  ;;  %v3245_v37 = vld [vmem:[#allocation2 + $0x14] ss:$0 sps:$4 sm:$0x11]  }
 0x118   : > { %1906 = vrot.lane.b32.xlu0 %v1861_v38, %s3318_s6  ;;  %v2733_v46 = vsel %vm2719_vm8, %v2691_v29, 0  ;;  %v2913_v38 = vcombine.low %v797_v57, %v4430_v19  ;;  %v2606_v8 = vsel %vm2580_vm15, %v2573_v61, %v1929_v34  ;;  %v934_v19 = vld [vmem:[#allocation2 + $0x78] sm:$0xe]  ;;  %v2198_v34 = vor.u32 %v2197_v22, %v2193_v49 }
 0x119   : > { %1408 = vrot.lane.b32.xlu1 %v1370_v53, %s3319_s7  ;;  %3038 = vmatpush3.bf16.xpose.msra.mxu0 %v2733_v46  ;;  %v1081_v53 = vrot.slane %v1079_v52, 1  ;;  %v1587_v44 = vshll.u32 %v2929_v33, 16  ;;  %v3017_v29 = vcombine.low %v934_v19, %v4458_v55  ;;  %v1585_v13 = vshrl.u32 %v2929_v33, 16  ;;  %v879_v55 = vld [vmem:[#allocation2 + $0x1c] sm:$0xf] }
 0x11a   : > { %v4472_v16 = vpop.permute.xlu0 %1271  ;;  %v1344_v35 = vrot.slane %v2913_v38, 1  ;;  %v1592_v51 = vshll.u32 %v3245_v37, 16  ;;  %v2203_v11 = vsel %vm1070_vm6, %v2198_v34, %v2202_v26  ;;  %v1857_v61 = vrot.slane %v3245_v37, 1 }
 0x11b   : > { %v2041_v10 = vpop.permute.xlu1 %2040  ;;  %v1082_v63 = vsel %vm1070_vm6, %v1077_v59, %v1081_v53  ;;  %v1589_v23 = vrot.slane %v1587_v44, 1  ;;  %v2392_v12 = vrot.slane %v3017_v29, 1  ;;  %v2458_v15 = vsel %vm2448_vm11, %v3856_v0, %v4472_v16 }
 0x11c   : > { %2018 = vrot.lane.b32.xlu0 %v4413_v4, %s3314_s29  ;;  %v2639_v28 = vsel %vm2613_vm1, %v2606_v8, %v2041_v10  ;;  %v1346_v46 = vsel %vm1343_vm7, %v1344_v35, %v1345_v3  ;;  %v1594_v20 = vrot.slane %v1592_v51, 1  ;;  %v2369_v29 = vrot.slane %v3249_v24, 1 }
 0x11d   : > { %1520 = vrot.lane.b32.xlu1 %v4417_v6, %s3317_s5  ;;  %v2373_v6 = vsel %vm1343_vm7, %v2371_v40, %v2372_v45  ;;  %v861_v40 = vld [vmem:[#allocation2 + $0xc] sm:$0xe]  ;;  %v878_v45 = vld [vmem:[#allocation2 + $0x18] sm:$0xf]  ;;  %v1590_v7 = vor.u32 %v1589_v23, %v1585_v13 }
 0x11e   : > { %v1401_v4 = vpop.permute.xlu0 %1400  ;;  %v2961_v57 = vcombine.low %v861_v40, %v4485_v36  ;;  %v2977_v54 = vcombine.low %v878_v45, %v879_v55 }
 0x11f   : > { %v2313_v1 = vpop.permute.xlu1 %2312 }
 0x120   : > { %2290 = vrot.lane.b32.xlu0 %v2119_v42, %s3316_s4  ;;  %v2672_v21 = vsel %vm2646_vm2, %v2639_v28, %v2313_v1  ;;  %v2491_v42 = vsel %vm2481_vm12, %v2458_v15, %v1401_v4  ;;  %v1856_v60 = vrot.slane %v2961_v57, 1  ;;  %v2099_v1 = vshll.u32 %v2977_v54, 16 }
 0x121   : > { %1792 = vrot.lane.b32.xlu1 %v1691_v43, %s3321_s9  ;;  %v1595_v43 = vsel %vm1070_vm6, %v1590_v7, %v1594_v20  ;;  %v2097_v8 = vshrl.u32 %v2977_v54, 16 }
 0x122   : > { %v1513_v48 = vpop.permute.xlu0 %1512  ;;  %v1858_v59 = vsel %vm1343_vm7, %v1856_v60, %v1857_v61  ;;  %v2101_v53 = vrot.slane %v2099_v1, 1 }
 0x123   : > { %v2441_v56 = vpop.permute.xlu1 %2440  ;;  %v2524_v36 = vsel %vm2514_vm13, %v2491_v42, %v1513_v48 }
 0x124   : > { %v2705_v39 = vsel %vm2679_vm4, %v2672_v21, %v2441_v56  ;;  %2418 = vrot.lane.b32.xlu0 %v2373_v6, %s3315_s30  ;;  %v2102_v56 = vor.u32 %v2101_v53, %v2097_v8 }
 0x125   : > { %1920 = vrot.lane.b32.xlu1 %v1882_v30, %s3318_s6  ;;  %3054 = vmatprep.subr.msk.bf16.mxu0 %vm2719_vm8, %v2705_v39  ;;  %v3009_v39 = vcombine.low %v926_v41, %v879_v55 }
 0x126   : > { %v1785_v25 = vpop.permute.xlu0 %1784 }
 0x127   : > { %v1286_v31 = vpop.permute.xlu1 %1285  ;;  %v2557_v38 = vsel %vm2547_vm14, %v2524_v36, %v1785_v25  ;;  %v2368_v44 = vrot.slane %v3009_v39, 1 }
 0x128   : > { %1263 = vrot.lane.b32.xlu0 %v1082_v63, %s3320_s8  ;;  %v2472_v16 = vsel %vm2448_vm11, %v3916_v18, %v1286_v31  ;;  %v4534_v63 = vld [vmem:[%s4666_s1] sm:$0xf] }
 0x129   : > { %2032 = vrot.lane.b32.xlu1 %v2985_v62, %s3314_s29  ;;  %v2394_v62 = vsel %vm1343_vm7, %v2392_v12, %v2393_v47  ;;  %3049 = vmatprep.mubr.msk.bf16.mxu0 %vm2719_vm8, %v4534_v63  ;;  %v2370_v51 = vsel %vm1343_vm7, %v2368_v44, %v2369_v29 }
 0x12a   : > { %v1913_v32 = vpop.permute.xlu0 %1912 }
 0x12b   : > { %v1415_v10 = vpop.permute.xlu1 %1414  ;;  %v2590_v0 = vsel %vm2580_vm15, %v2557_v38, %v1913_v32  ;;  %v2713_v32 = vld [vmem:[%s4667_s2] sm:$0xff] }
 0x12c   : > { %1392 = vrot.lane.b32.xlu0 %v1346_v46, %s3319_s7  ;;  %v2505_v48 = vsel %vm2481_vm12, %v2472_v16, %v1415_v10 }
 0x12d   : > { %2304 = vrot.lane.b32.xlu1 %v2203_v11, %s3316_s4 }
 0x12e   : > { %v2025_v9 = vpop.permute.xlu0 %2024 }
 0x12f   : > { %v1527_v52 = vpop.permute.xlu1 %1526  ;;  %v2623_v4 = vsel %vm2613_vm1, %v2590_v0, %v2025_v9 }
 0x130   : > { %1504 = vrot.lane.b32.xlu0 %v2929_v33, %s3317_s5  ;;  %v2104_v33 = vshll.u32 %v3249_v24, 16  ;;  %v2538_v35 = vsel %vm2514_vm13, %v2505_v48, %v1527_v52  ;;  %s3251_s5 = scalar_lea.vmem %s2816_s27, 256 }
 0x131   : > { %2432 = vrot.lane.b32.xlu1 %v2394_v62, %s3315_s30  ;;  %p3252_p11 = scmp.ne.s32.totalorder %s2816_s27, %s3251_s5 }
 0x132   : > { %v2297_v6 = vpop.permute.xlu0 %2296  ;;  %v2106_v19 = vrot.slane %v2104_v33, 1 }
 0x133   : > { %v1799_v30 = vpop.permute.xlu1 %1798  ;;  %v2656_v28 = vsel %vm2646_vm2, %v2623_v4, %v2297_v6  ;;  %p3253_p12 = pnand %p3252_p11, %p3381_p5 }
 0x134   : > { %1776 = vrot.lane.b32.xlu0 %v1595_v43, %s3321_s9  ;;  %v2571_v34 = vsel %vm2547_vm14, %v2538_v35, %v1799_v30  ;;  %v2107_v26 = vsel %vm1070_vm6, %v2102_v56, %v2106_v19 }
 0x135   : > { %p3254_p13 = pneg %p3253_p12 }
 0x136   : > { %v2425_v49 = vpop.permute.xlu0 %2424 }
 0x137   : > { %v1927_v22 = vpop.permute.xlu1 %1926  ;;  %v2689_v21 = vsel %vm2679_vm4, %v2656_v28, %v2425_v49 }
 0x138   : > { %1904 = vrot.lane.b32.xlu0 %v1858_v59, %s3318_s6  ;;  %v2731_v18 = vsel %vm2719_vm8, %v2689_v21, 0  ;;  %v2604_v46 = vsel %vm2580_vm15, %v2571_v34, %v1927_v22  ;;  %s3255_s6 = sshll.u32 %s3322_s16, 4  ;;  %s3256_s6 = int_to_ptr.vmem [resolvable:$false] %s3255_s6 }
 0x139   : > { %3040 = vmatpush3.bf16.xpose.msra.mxu0 %v2731_v18  ;;  %s3257_s7 = scalar_lea.vmem %s3256_s6, 512  ;;  %p3258_p0 = scmp.lt.s32.totalorder %s2816_s27, %s3256_s6 }
 0x13a   : > { %v1270_v3 = vpop.permute.xlu0 %1269  ;;  %p3259_p1 = scmp.lt.s32.totalorder %s3257_s7, %s3251_s5 }
 0x13b   : > { %v2039_v37 = vpop.permute.xlu1 %2038  ;;  %v2456_v62 = vsel %vm2448_vm11, %v4020_v17, %v1270_v3 }
 0x13c   : > { %2016 = vrot.lane.b32.xlu0 %v2977_v54, %s3314_s29  ;;  %v2637_v13 = vsel %vm2613_vm1, %v2604_v46, %v2039_v37  ;;  %p3260_p2 = por %p3259_p1, %p3258_p0 }
 0x13e   : > { %v1399_v25 = vpop.permute.xlu0 %1398  ;;  %p3261_p3 = pnand %p3260_p2, %p3254_p13 }
 0x13f   : > { %v2311_v31 = vpop.permute.xlu1 %2310  ;;  %v2489_v57 = vsel %vm2481_vm12, %v2456_v62, %v1399_v25 }
 0x140   : > { %2288 = vrot.lane.b32.xlu0 %v2107_v26, %s3316_s4  ;;  %v2670_v23 = vsel %vm2646_vm2, %v2637_v13, %v2311_v31  ;;  %s2801_s4 = scalar_lea.sflag [#allocation4], %s161_s20 }
 0x142   : > { %v1511_v11 = vpop.permute.xlu0 %1510 }
 0x143   : > { %v2439_v12 = vpop.permute.xlu1 %2438  ;;  %v2522_v54 = vsel %vm2514_vm13, %v2489_v57, %v1511_v11 }
 0x144   : > { %v2703_v47 = vsel %vm2679_vm4, %v2670_v23, %v2439_v12  ;;  %2416 = vrot.lane.b32.xlu0 %v2370_v51, %s3315_s30  ;;  %s4630_s30 = scalar_lea.hbm %s4668_s3, %s3032_s25 }
 0x145   : > { %3055 = vmatprep.subr.msk.bf16.mxu0 %vm2719_vm8, %v2703_v47 }
 0x146   : > { %v1783_v10 = vpop.permute.xlu0 %1782 }
 0x147   : > { %v1284_v40 = vpop.permute.xlu1 %1283  ;;  %v2555_v15 = vsel %vm2547_vm14, %v2522_v54, %v1783_v10 }
 0x148   : > { %2716 = vperm.xlu0 %3107, %v2713_v32   ;;  %v2470_v42 = vsel %vm2448_vm11, %v4081_v50, %v1284_v40 }
 0x14a   : > { %v1911_v45 = vpop.permute.xlu0 %1910 }
 0x14b   : > { %v1413_v55 = vpop.permute.xlu1 %1412  ;;  %v2588_v61 = vsel %vm2580_vm15, %v2555_v15, %v1911_v45 }
 0x14c   : > { %v2503_v17 = vsel %vm2481_vm12, %v2470_v42, %v1413_v55 }
 0x14e   : > { %v2023_v20 = vpop.permute.xlu0 %2022 }
 0x14f   : > { %v1525_v7 = vpop.permute.xlu1 %1524  ;;  %v2621_v43 = vsel %vm2613_vm1, %v2588_v61, %v2023_v20 }
 0x150   : > { %v2536_v30 = vsel %vm2514_vm13, %v2503_v17, %v1525_v7 }
 0x152   : > { %v2295_v9 = vpop.permute.xlu0 %2294 }
 0x153   : > { %v1797_v52 = vpop.permute.xlu1 %1796  ;;  %v2654_v60 = vsel %vm2646_vm2, %v2621_v43, %v2295_v9 }
 0x154   : > { %v2569_v16 = vsel %vm2547_vm14, %v2536_v30, %v1797_v52 }
 0x156   : > { %v2423_v24 = vpop.permute.xlu0 %2422 }
 0x157   : > { %v1925_v1 = vpop.permute.xlu1 %1924  ;;  %v2687_v36 = vsel %vm2679_vm4, %v2654_v60, %v2423_v24 }
 0x158   : > { %v2729_v6 = vsel %vm2719_vm8, %v2687_v36, 0  ;;  %v2602_v4 = vsel %vm2580_vm15, %v2569_v16, %v1925_v1 }
 0x159   : > { %3042 = vmatpush3.bf16.xpose.msra.mxu0 %v2729_v6 }
 0x15a   : > { %v1268_v38 = vpop.permute.xlu0 %1267 }
 0x15b   : > { %v2037_v0 = vpop.permute.xlu1 %2036  ;;  %v2454_v19 = vsel %vm2448_vm11, %v4185_v58, %v1268_v38 }
 0x15c   : > { %v2635_v59 = vsel %vm2613_vm1, %v2602_v4, %v2037_v0 }
 0x15e   : > { %v1397_v50 = vpop.permute.xlu0 %1396 }
 0x15f   : > { %v2309_v8 = vpop.permute.xlu1 %2308  ;;  %v2487_v39 = vsel %vm2481_vm12, %v2454_v19, %v1397_v50 }
 0x160   : > { %v2668_v33 = vsel %vm2646_vm2, %v2635_v59, %v2309_v8 }
 0x162   : > { %v1509_v53 = vpop.permute.xlu0 %1508 }
 0x163   : > { %v2437_v28 = vpop.permute.xlu1 %2436  ;;  %v2520_v35 = vsel %vm2514_vm13, %v2487_v39, %v1509_v53 }
 0x164   : > { %v2701_v49 = vsel %vm2679_vm4, %v2668_v33, %v2437_v28 }
 0x165   : > { %3056 = vmatprep.subr.msk.bf16.mxu0 %vm2719_vm8, %v2701_v49 }
 0x166   : > { %v1781_v22 = vpop.permute.xlu0 %1780 }
 0x167   : > { %v1282_v41 = vpop.permute.xlu1 %1281  ;;  %v2553_v34 = vsel %vm2547_vm14, %v2520_v35, %v1781_v22 }
 0x168   : > { %v2468_v44 = vsel %vm2448_vm11, %v4242_v5, %v1282_v41 }
 0x16a   : > { %v1909_v48 = vpop.permute.xlu0 %1908 }
 0x16b   : > { %v1411_v21 = vpop.permute.xlu1 %1410  ;;  %v2586_v26 = vsel %vm2580_vm15, %v2553_v34, %v1909_v48 }
 0x16c   : > { %v2501_v58 = vsel %vm2481_vm12, %v2468_v44, %v1411_v21 }
 0x16e   : > { %v2021_v18 = vpop.permute.xlu0 %2020 }
 0x16f   : > { %v1523_v56 = vpop.permute.xlu1 %1522  ;;  %v2619_v29 = vsel %vm2613_vm1, %v2586_v26, %v2021_v18 }
 0x170   : > { %v2534_v11 = vsel %vm2514_vm13, %v2501_v58, %v1523_v56 }
 0x172   : > { %v2293_v3 = vpop.permute.xlu0 %2292 }
 0x173   : > { %v1795_v37 = vpop.permute.xlu1 %1794  ;;  %v2652_v25 = vsel %vm2646_vm2, %v2619_v29, %v2293_v3 }
 0x174   : > { %v2567_v47 = vsel %vm2547_vm14, %v2534_v11, %v1795_v37 }
 0x176   : > { %v2421_v31 = vpop.permute.xlu0 %2420 }
 0x177   : > { %v1923_v46 = vpop.permute.xlu1 %1922  ;;  %v2685_v13 = vsel %vm2679_vm4, %v2652_v25, %v2421_v31 }
 0x178   : > { %v2727_v51 = vsel %vm2719_vm8, %v2685_v13, 0  ;;  %v2600_v10 = vsel %vm2580_vm15, %v2567_v47, %v1923_v46 }
 0x179   : > { %3044 = vmatpush3.bf16.xpose.msra.mxu0 %v2727_v51 }
 0x17a   : > { %v1266_v23 = vpop.permute.xlu0 %1265 }
 0x17b   : > { %v2035_v12 = vpop.permute.xlu1 %2034  ;;  %v2452_v61 = vsel %vm2448_vm11, %v4322_v27, %v1266_v23 }
 0x17c   : > { %v2633_v40 = vsel %vm2613_vm1, %v2600_v10, %v2035_v12 }
 0x17e   : > { %v1395_v5 = vpop.permute.xlu0 %1394 }
 0x17f   : > { %v2307_v32 = vpop.permute.xlu1 %2306  ;;  %v2485_v42 = vsel %vm2481_vm12, %v2452_v61, %v1395_v5 }
 0x180   : > { %v2666_v55 = vsel %vm2646_vm2, %v2633_v40, %v2307_v32 }
 0x182   : > { %v1507_v45 = vpop.permute.xlu0 %1506 }
 0x183   : > { %v2435_v20 = vpop.permute.xlu1 %2434  ;;  %v2518_v43 = vsel %vm2514_vm13, %v2485_v42, %v1507_v45 }
 0x184   : > { %v2699_v7 = vsel %vm2679_vm4, %v2666_v55, %v2435_v20 }
 0x185   : > { %3057 = vmatprep.subr.msk.bf16.mxu0 %vm2719_vm8, %v2699_v7 }
 0x186   : > { %v1779_v62 = vpop.permute.xlu0 %1778 }
 0x187   : > { %v1280_v57 = vpop.permute.xlu1 %1279  ;;  %v2551_v1 = vsel %vm2547_vm14, %v2518_v43, %v1779_v62 }
 0x188   : > { %v2466_v36 = vsel %vm2448_vm11, %v4374_v2, %v1280_v57 }
 0x18a   : > { %v1907_v54 = vpop.permute.xlu0 %1906 }
 0x18b   : > { %v1409_v9 = vpop.permute.xlu1 %1408  ;;  %v2584_v17 = vsel %vm2580_vm15, %v2551_v1, %v1907_v54 }
 0x18c   : > { %v2499_v27 = vsel %vm2481_vm12, %v2466_v36, %v1409_v9 }
 0x18e   : > { %v2019_v52 = vpop.permute.xlu0 %2018 }
 0x18f   : > { %v1521_v15 = vpop.permute.xlu1 %1520  ;;  %v2617_v6 = vsel %vm2613_vm1, %v2584_v17, %v2019_v52 }
 0x190   : > { %v2532_v8 = vsel %vm2514_vm13, %v2499_v27, %v1521_v15 }
 0x192   : > { %v2291_v60 = vpop.permute.xlu0 %2290 }
 0x193   : > { %v1793_v24 = vpop.permute.xlu1 %1792  ;;  %v2650_v30 = vsel %vm2646_vm2, %v2617_v6, %v2291_v60 }
 0x194   : > { %v2565_v53 = vsel %vm2547_vm14, %v2532_v8, %v1793_v24 }
 0x196   : > { %v2419_v38 = vpop.permute.xlu0 %2418 }
 0x197   : > { %v1921_v0 = vpop.permute.xlu1 %1920  ;;  %v2683_v16 = vsel %vm2679_vm4, %v2650_v30, %v2419_v38 }
 0x198   : > { %v2725_v50 = vsel %vm2719_vm8, %v2683_v16, 0  ;;  %v2598_v28 = vsel %vm2580_vm15, %v2565_v53, %v1921_v0 }
 0x199   : > { %3046 = vmatpush3.bf16.xpose.msra.mxu0 %v2725_v50 }
 0x19a   : > { %v1264_v4 = vpop.permute.xlu0 %1263 }
 0x19b   : > { %v2033_v59 = vpop.permute.xlu1 %2032  ;;  %v2450_v39 = vsel %vm2448_vm11, %v4446_v14, %v1264_v4 }
 0x19c   : > { %v2631_v49 = vsel %vm2613_vm1, %v2598_v28, %v2033_v59 }
 0x19e   : > { %v1393_v2 = vpop.permute.xlu0 %1392 }
 0x19f   : > { %v2305_v33 = vpop.permute.xlu1 %2304  ;;  %v2483_v35 = vsel %vm2481_vm12, %v2450_v39, %v1393_v2 }
 0x1a0   : > { %v2664_v41 = vsel %vm2646_vm2, %v2631_v49, %v2305_v33 }
 0x1a2   : > { %v1505_v22 = vpop.permute.xlu0 %1504 }
 0x1a3   : > { %v2433_v48 = vpop.permute.xlu1 %2432  ;;  %v2516_v3 = vsel %vm2514_vm13, %v2483_v35, %v1505_v22 }
 0x1a4   : > { %v2697_v21 = vsel %vm2679_vm4, %v2664_v41, %v2433_v48 }
 0x1a5   : > { %3058 = vmatprep.subr.msk.bf16.mxu0 %vm2719_vm8, %v2697_v21 }
 0x1a6   : > { %v1777_v18 = vpop.permute.xlu0 %1776 }
 0x1a7   : > { %v2549_v34 = vsel %vm2547_vm14, %v2516_v3, %v1777_v18 }
 0x1aa   : > { %v1905_v56 = vpop.permute.xlu0 %1904 }
 0x1ab   : > { %v2582_v26 = vsel %vm2580_vm15, %v2549_v34, %v1905_v56 }
 0x1ae   : > { %v2017_v19 = vpop.permute.xlu0 %2016 }
 0x1af   : > { %v2615_v44 = vsel %vm2613_vm1, %v2582_v26, %v2017_v19 }
 0x1b2   : > { %v2289_v37 = vpop.permute.xlu0 %2288 }
 0x1b3   : > { %v2648_v29 = vsel %vm2646_vm2, %v2615_v44, %v2289_v37 }
 0x1b6   : > { %v2417_v25 = vpop.permute.xlu0 %2416 }
 0x1b7   : > { %v2681_v31 = vsel %vm2679_vm4, %v2648_v29, %v2417_v25 }
 0x1b8   : > { %v2723_v46 = vsel %vm2719_vm8, %v2681_v31, 0 }
 0x1b9   : > { %3048 = vmatpush3.bf16.xpose.msra.mxu0 %v2723_v46 }
 0x1c0   : > { %3050 = vmatmul.mubr.msk.bf16.vlgmr.msra.gmra.mxu0 %vm2719_vm8, %v4534_v63 }
 0x1c3   : > { %v2717_v14 = vpop.permute.xlu0 %2716 }
 0x280   : > { %v2789_v58 = vpop.f32.mrf.mxu0 }
 0x281   : > { %v2790_v13 = vadd.f32 %v2789_v58, %v2717_v14 }
 0x282   : > { %v2791_v51 = vpop.f32.mrf.mxu0 }
 0x283   : > { %v2796_v11 = vmax.f32 %v2790_v13, 0.0  ;;  %v2792_v23 = vadd.f32 %v2791_v51, %v2717_v14 }
 0x284   : > { %v2793_v12 = vpop.f32.mrf.mxu0 }
 0x285   : > { %2798 = vst [vmem:[%s163_s26] sm:$0xff] %v2796_v11  ;;  %v2797_v47 = vmax.f32 %v2792_v23, 0.0 }
 0x286   : > { %v2794_v63 = vpop.f32.mrf.mxu0 }
 0x287   : > { %2799 = vst [vmem:[%s163_s26 + $0x8] sm:$0xff] %v2797_v47 }
 0x288   : > { %3264 = shalt.err (!%p3261_p3)
}
 0x289   : > { %s3265_s8 = scalar_lea.hbm %s4630_s30, 256  ;;  %s3269_s11 = scalar_lea.hbm %s4668_s3, 512 }
 0x28a   : > { %p3266_p4 = scmp.ne.s32.totalorder %s4630_s30, %s3265_s8  ;;  %p3270_p9 = scmp.lt.s32.totalorder %s4630_s30, %s4668_s3 }
 0x28b   : > { %p3271_p10 = scmp.lt.s32.totalorder %s3269_s11, %s3265_s8 }
 0x28c   : > { %p3267_p7 = pnand %p3266_p4, %p3381_p5 }
 0x28d   : > { %p3272_p11 = por %p3271_p10, %p3270_p9 }
 0x28e   : > { %p3268_p8 = pneg %p3267_p7 }
 0x290   : > { %p3273_p12 = pnand %p3272_p11, %p3268_p8 }
 0x292   : > { %3276 = shalt.err (!%p3273_p12)
}
 0x293   : > { %3059 = dma.vmem_to_hbm [thread:$0]  (%p3381_p5), %s2816_s27, 256, %s4630_s30, %s2801_s4  }
 0x294 PF: > { %p3065_p13 = scmp.ge.s32.totalorder %s3311_s15, 2  ;;  %s2827_s20 = sand.u32 1, %s3299_s12  }
 0x295   : > { %s2828_s24 = scalar_lea.sflag [#allocation4], %s2827_s20 }
 0x296   : > { %p3062_p0 = pnand %p3065_p13, %p3385_p6 }
 0x298   : > { %p3063_p1 = pneg %p3062_p0 }
 0x29a   : > { %3294 = dma.done.wait (%p3063_p1), %s2828_s24, 256  }
 0x29b   : > { %3296 = vsyncadd (%p3063_p1), %s2828_s24, 4294967040  ;;  %p13_p2 = scmp.ge.s32.totalorder %s3368_s18, 4   ;;  %s4679_s12 = smov %s3303_s13 }
 0x29c   : > { %s4680_s13 = smov %s3307_s14  ;;  %s4681_s14 = smov %s3379_s21 }
 0x29d   : > { %s4682_s15 = smov %s3368_s18  ;;  %15 = sbr.rel (!%p13_p2) target bundleno = 3 (0x3), region = 70 }
 0x2a2   :  { %2833 = vsyncpa [#allocation4], 1 }
 0x2a3   :  { %2835 = vsyncpa [#allocation4 + $0x1], 1 }

</bundles_post_ra>
